<compile_context>
chip_gen: v6e
topology: v6e:2x2x1
jax: 0.10.0
libtpu: 0.0.40
codegen_flags: <defaults>
</compile_context>

<pallas_src>
import jax
import jax.numpy as jnp
from jax.experimental import pallas as pl
from jax.experimental.pallas import tpu as pltpu


def _shift(v, off, axis):
    # result[..., i, ...] = v[..., i + off, ...], zero-filled out of range.
    # Static slice + concat with zeros: value-level, no scratch memory.
    if off == 0:
        return v
    zshape = list(v.shape)
    zshape[axis] = abs(off)
    zeros = jnp.zeros(tuple(zshape), v.dtype)
    idx = [slice(None)] * v.ndim
    if off > 0:
        idx[axis] = slice(off, None)
        return jnp.concatenate([v[tuple(idx)], zeros], axis=axis)
    idx[axis] = slice(None, off)
    return jnp.concatenate([zeros, v[tuple(idx)]], axis=axis)


def _make_conv_kernel(H, W, Cin, Cout, K, apply_relu):
    pad = K // 2
    HW = H * W
    KKC = K * K * Cin

    def kernel(x_ref, w_ref, b_ref, o_ref):
        x = x_ref[0]                                   # (H, W, Cin), channels on lanes
        # Full im2col, statically unrolled (K is tiny): (H, W, K*K*Cin)
        taps = []
        for dy in range(K):
            xs = _shift(x, dy - pad, 0)                # one H-shift per kernel row
            for dx in range(K):
                taps.append(_shift(xs, dx - pad, 1))   # W-shifts reuse xs
        # (H, W, K*K*Cin) -> (H*W, K*K*Cin); W is a multiple of 8 so the merge
        # of (H, W) onto the sublane axis is layout-free.
        patches = jnp.concatenate(taps, axis=-1).reshape(HW, KKC)
        # Single MXU matmul per grid step: contraction depth = K*K*Cin.
        y = jnp.dot(patches, w_ref[...], preferred_element_type=jnp.float32)
        y = y + b_ref[...]                             # fused bias (zeros if bias=False)
        if apply_relu:
            y = jnp.maximum(y, 0.0)                    # fused ReLU epilogue
        o_ref[0] = y.reshape(H, W, Cout)

    return kernel


def basic_conv(x_nchw, weight, bias=None, *, stride=1, relu=True):
    """Pallas implementation of BasicConv.forward (default norm=False path)."""
    B, Cin, H, W = x_nchw.shape
    Cout, Cin_w, K, K2 = weight.shape
    assert K == K2 and Cin_w == Cin
    assert K % 2 == 1, "even kernel_size not supported"
    # TODO(synk): transpose=True (ConvTranspose2d), groups>1 and norm=True
    # (BatchNorm2d) paths of BasicConv are not implemented in this kernel.
    pad = K // 2

    # --- host-side glue: layout + weight packing (done once, outside the kernel) ---
    x_nhwc = jnp.transpose(x_nchw, (0, 2, 3, 1)).astype(jnp.float32)       # (B,H,W,Cin)
    Wp = ((W + 7) // 8) * 8
    if Wp != W:
        # Zero padding on the right is exactly the conv's own "same" padding;
        # padded output columns are sliced off below.
        x_nhwc = jnp.pad(x_nhwc, ((0, 0), (0, 0), (0, Wp - W), (0, 0)))

    # (Cout, Cin, K, K) -> (K*K*Cin, Cout); row index = (dy*K + dx)*Cin + ci
    w2 = jnp.transpose(weight, (2, 3, 1, 0)).reshape(K * K * Cin, Cout)
    w2 = w2.astype(jnp.float32)
    b = (bias if bias is not None else jnp.zeros((Cout,), jnp.float32))
    b = b.reshape(1, Cout).astype(jnp.float32)

    kernel = _make_conv_kernel(H, Wp, Cin, Cout, K, relu)

    y = pl.pallas_call(
        kernel,
        out_shape=jax.ShapeDtypeStruct((B, H, Wp, Cout), jnp.float32),
        grid=(B,),
        in_specs=[
            pl.BlockSpec((1, H, Wp, Cin), lambda bb: (bb, 0, 0, 0)),
            pl.BlockSpec((K * K * Cin, Cout), lambda bb: (0, 0)),
            pl.BlockSpec((1, Cout), lambda bb: (0, 0)),
        ],
        out_specs=pl.BlockSpec((1, H, Wp, Cout), lambda bb: (bb, 0, 0, 0)),
        compiler_params=pltpu.CompilerParams(dimension_semantics=("parallel",)),
    )(x_nhwc, w2, b)

    y = y[:, :, :W, :]                                                     # drop W padding
    y = jnp.transpose(y, (0, 3, 1, 2))                                     # NHWC -> NCHW
    if stride > 1:
        # TODO(synk): stride>1 is handled by subsampling the stride-1 "same" output
        # (exact for odd K); an in-kernel strided im2col would avoid the wasted compute.
        Ho = (H + 2 * pad - K) // stride + 1
        Wo = (W + 2 * pad - K) // stride + 1
        y = y[:, :, ::stride, ::stride][:, :, :Ho, :Wo]
    return y


def basic_conv_ref(x_nchw, weight, bias, stride, relu):
    """Pure-JAX reference (XLA conv) for correctness checking."""
    K = weight.shape[2]
    pad = K // 2
    y = jax.lax.conv_general_dilated(
        x_nchw.astype(jnp.float32), weight.astype(jnp.float32),
        window_strides=(stride, stride),
        padding=[(pad, pad), (pad, pad)],
        dimension_numbers=("NCHW", "OIHW", "NCHW"),
        precision=jax.lax.Precision.HIGHEST)
    if bias is not None:
        y = y + bias.reshape(1, -1, 1, 1)
    if relu:
        y = jnp.maximum(y, 0.0)
    return y


if __name__ == "__main__":
    key = jax.random.PRNGKey(0)
    kx, kw, kb = jax.random.split(key, 3)

    # BasicConv(in_channel=16, out_channel=32, kernel_size=3, stride=1)
    # (defaults: bias=False, norm=False, relu=True, transpose=False, groups=1)
    B, Cin, H, W = 2, 16, 16, 16
    Cout, K = 32, 3

    x = jax.random.normal(kx, (B, Cin, H, W), jnp.float32)
    weight = 0.1 * jax.random.normal(kw, (Cout, Cin, K, K), jnp.float32)
    bias = 0.1 * jax.random.normal(kb, (Cout,), jnp.float32)

    # Config 1: default BasicConv path (bias=False, relu=True, stride=1).
    y = basic_conv(x, weight, bias=None, stride=1, relu=True)
    y = jax.block_until_ready(y)
    assert y.shape == (B, Cout, H, W), y.shape
    assert bool(jnp.all(jnp.isfinite(y)))
    y_ref = basic_conv_ref(x, weight, None, 1, True)
    err = float(jnp.max(jnp.abs(y - y_ref)))
    assert err < 1e-3, f"stride=1 max abs err vs XLA conv reference: {err}"

    # Config 2: bias=True, stride=2 (downsampling use of BasicConv).
    y2 = basic_conv(x, weight, bias=bias, stride=2, relu=True)
    y2 = jax.block_until_ready(y2)
    y2_ref = basic_conv_ref(x, weight, bias, 2, True)
    assert y2.shape == y2_ref.shape, (y2.shape, y2_ref.shape)
    err2 = float(jnp.max(jnp.abs(y2 - y2_ref)))
    assert err2 < 1e-3, f"stride=2 max abs err vs XLA conv reference: {err2}"

    print("KERNEL_OK")
</pallas_src>

<mosaic_0001>
module attributes {stable_mosaic.version = 11 : i64} {
  func.func @kernel(%arg0: i32, %arg1: memref<1x16x16x16xf32, #tpu.memory_space<vmem>>, %arg2: memref<144x32xf32, #tpu.memory_space<vmem>>, %arg3: memref<1x32xf32, #tpu.memory_space<vmem>>, %arg4: memref<1x16x16x32xf32, #tpu.memory_space<vmem>>) attributes {dimension_semantics = [#tpu.dimension_semantics<parallel>], iteration_bounds = array<i64: 2>, scalar_prefetch = 0 : i64, scratch_operands = 0 : i64, tpu.core_type = #tpu.core_type<tc>, window_params = [{transform_indices = @transform_0, window_bounds = array<i64: 1, 16, 16, 16>}, {pipeline_mode = #tpu.pipeline_mode<synchronous>, transform_indices = @transform_1, window_bounds = array<i64: 144, 32>}, {pipeline_mode = #tpu.pipeline_mode<synchronous>, transform_indices = @transform_2, window_bounds = array<i64: 1, 32>}, {transform_indices = @transform_3, window_bounds = array<i64: 1, 16, 16, 32>}]} {
    %c0 = arith.constant 0 : index
    %c0_0 = arith.constant 0 : index
    %c0_1 = arith.constant 0 : index
    %c0_2 = arith.constant 0 : index
    %0 = vector.load %arg1[%c0, %c0_0, %c0_1, %c0_2] : memref<1x16x16x16xf32, #tpu.memory_space<vmem>>, vector<1x16x16x16xf32>
    %1 = vector.shape_cast %0 : vector<1x16x16x16xf32> to vector<16x16x16xf32>
    %cst = arith.constant 0.000000e+00 : f32
    %2 = vector.broadcast %cst : f32 to vector<1x16x16xf32>
    %3 = vector.extract_strided_slice %1 {offsets = [0, 0, 0], sizes = [15, 16, 16], strides = [1, 1, 1]} : vector<16x16x16xf32> to vector<15x16x16xf32>
    %4 = tpu.concatenate %2, %3 in 0 : vector<1x16x16xf32>, vector<15x16x16xf32> -> vector<16x16x16xf32>
    %cst_3 = arith.constant 0.000000e+00 : f32
    %5 = vector.broadcast %cst_3 : f32 to vector<16x1x16xf32>
    %6 = vector.extract_strided_slice %4 {offsets = [0, 0, 0], sizes = [16, 15, 16], strides = [1, 1, 1]} : vector<16x16x16xf32> to vector<16x15x16xf32>
    %7 = tpu.concatenate %5, %6 in 1 : vector<16x1x16xf32>, vector<16x15x16xf32> -> vector<16x16x16xf32>
    %cst_4 = arith.constant 0.000000e+00 : f32
    %8 = vector.broadcast %cst_4 : f32 to vector<16x1x16xf32>
    %9 = vector.extract_strided_slice %4 {offsets = [0, 1, 0], sizes = [16, 15, 16], strides = [1, 1, 1]} : vector<16x16x16xf32> to vector<16x15x16xf32>
    %10 = tpu.concatenate %9, %8 in 1 : vector<16x15x16xf32>, vector<16x1x16xf32> -> vector<16x16x16xf32>
    %cst_5 = arith.constant 0.000000e+00 : f32
    %11 = vector.broadcast %cst_5 : f32 to vector<16x1x16xf32>
    %12 = vector.extract_strided_slice %1 {offsets = [0, 0, 0], sizes = [16, 15, 16], strides = [1, 1, 1]} : vector<16x16x16xf32> to vector<16x15x16xf32>
    %13 = tpu.concatenate %11, %12 in 1 : vector<16x1x16xf32>, vector<16x15x16xf32> -> vector<16x16x16xf32>
    %cst_6 = arith.constant 0.000000e+00 : f32
    %14 = vector.broadcast %cst_6 : f32 to vector<16x1x16xf32>
    %15 = vector.extract_strided_slice %1 {offsets = [0, 1, 0], sizes = [16, 15, 16], strides = [1, 1, 1]} : vector<16x16x16xf32> to vector<16x15x16xf32>
    %16 = tpu.concatenate %15, %14 in 1 : vector<16x15x16xf32>, vector<16x1x16xf32> -> vector<16x16x16xf32>
    %cst_7 = arith.constant 0.000000e+00 : f32
    %17 = vector.broadcast %cst_7 : f32 to vector<1x16x16xf32>
    %18 = vector.extract_strided_slice %1 {offsets = [1, 0, 0], sizes = [15, 16, 16], strides = [1, 1, 1]} : vector<16x16x16xf32> to vector<15x16x16xf32>
    %19 = tpu.concatenate %18, %17 in 0 : vector<15x16x16xf32>, vector<1x16x16xf32> -> vector<16x16x16xf32>
    %cst_8 = arith.constant 0.000000e+00 : f32
    %20 = vector.broadcast %cst_8 : f32 to vector<16x1x16xf32>
    %21 = vector.extract_strided_slice %19 {offsets = [0, 0, 0], sizes = [16, 15, 16], strides = [1, 1, 1]} : vector<16x16x16xf32> to vector<16x15x16xf32>
    %22 = tpu.concatenate %20, %21 in 1 : vector<16x1x16xf32>, vector<16x15x16xf32> -> vector<16x16x16xf32>
    %cst_9 = arith.constant 0.000000e+00 : f32
    %23 = vector.broadcast %cst_9 : f32 to vector<16x1x16xf32>
    %24 = vector.extract_strided_slice %19 {offsets = [0, 1, 0], sizes = [16, 15, 16], strides = [1, 1, 1]} : vector<16x16x16xf32> to vector<16x15x16xf32>
    %25 = tpu.concatenate %24, %23 in 1 : vector<16x15x16xf32>, vector<16x1x16xf32> -> vector<16x16x16xf32>
    %26 = tpu.concatenate %7, %4, %10, %13, %1, %16, %22, %19, %25 in 2 : vector<16x16x16xf32>, vector<16x16x16xf32>, vector<16x16x16xf32>, vector<16x16x16xf32>, vector<16x16x16xf32>, vector<16x16x16xf32>, vector<16x16x16xf32>, vector<16x16x16xf32>, vector<16x16x16xf32> -> vector<16x16x144xf32>
    %27 = vector.shape_cast %26 : vector<16x16x144xf32> to vector<256x144xf32>
    %c0_10 = arith.constant 0 : index
    %c0_11 = arith.constant 0 : index
    %28 = vector.load %arg2[%c0_10, %c0_11] : memref<144x32xf32, #tpu.memory_space<vmem>>, vector<144x32xf32>
    %cst_12 = arith.constant dense<0.000000e+00> : vector<256x32xf32>
    %29 = tpu.matmul %27, %28, %cst_12 {dimension_numbers = #tpu.dot_dimension_numbers<[1], [0], [0], [1], [0, 0, 1, 1], [], []>} : vector<256x144xf32>, vector<144x32xf32>, vector<256x32xf32> -> vector<256x32xf32>
    %c0_13 = arith.constant 0 : index
    %c0_14 = arith.constant 0 : index
    %30 = vector.load %arg3[%c0_13, %c0_14] : memref<1x32xf32, #tpu.memory_space<vmem>>, vector<1x32xf32>
    %31 = vector.broadcast %30 : vector<1x32xf32> to vector<256x32xf32>
    %32 = arith.addf %29, %31 : vector<256x32xf32>
    %cst_15 = arith.constant 0.000000e+00 : f32
    %33 = vector.broadcast %cst_15 : f32 to vector<256x32xf32>
    %34 = arith.maximumf %32, %33 : vector<256x32xf32>
    %35 = vector.shape_cast %34 : vector<256x32xf32> to vector<16x16x32xf32>
    %c0_16 = arith.constant 0 : index
    %c0_17 = arith.constant 0 : index
    %c0_18 = arith.constant 0 : index
    %c0_19 = arith.constant 0 : index
    %36 = vector.load %arg4[%c0_16, %c0_17, %c0_18, %c0_19] : memref<1x16x16x32xf32, #tpu.memory_space<vmem>>, vector<1x16x16x32xf32>
    %37 = vector.shape_cast %36 : vector<1x16x16x32xf32> to vector<16x16x32xf32>
    %38 = vector.shape_cast %35 : vector<16x16x32xf32> to vector<1x16x16x32xf32>
    tpu.vector_store %arg4[%c0_16, %c0_17, %c0_18, %c0_19], %38 {strides = array<i32>} : memref<1x16x16x32xf32, #tpu.memory_space<vmem>>, vector<1x16x16x32xf32>,
    return
  }
  func.func @transform_0(%arg0: i32) -> (i32, i32, i32, i32) {
    %c0_i32 = arith.constant 0 : i32
    %c0_i32_0 = arith.constant 0 : i32
    %c0_i32_1 = arith.constant 0 : i32
    %c0_i32_2 = arith.constant 0 : i32
    return %arg0, %c0_i32, %c0_i32_0, %c0_i32_1 : i32, i32, i32, i32
  }
  func.func @transform_1(%arg0: i32) -> (i32, i32) {
    %c0_i32 = arith.constant 0 : i32
    %c0_i32_0 = arith.constant 0 : i32
    %c0_i32_1 = arith.constant 0 : i32
    return %c0_i32, %c0_i32_0 : i32, i32
  }
  func.func @transform_2(%arg0: i32) -> (i32, i32) {
    %c0_i32 = arith.constant 0 : i32
    %c0_i32_0 = arith.constant 0 : i32
    %c0_i32_1 = arith.constant 0 : i32
    return %c0_i32, %c0_i32_0 : i32, i32
  }
  func.func @transform_3(%arg0: i32) -> (i32, i32, i32, i32) {
    %c0_i32 = arith.constant 0 : i32
    %c0_i32_0 = arith.constant 0 : i32
    %c0_i32_1 = arith.constant 0 : i32
    %c0_i32_2 = arith.constant 0 : i32
    return %arg0, %c0_i32, %c0_i32_0, %c0_i32_1 : i32, i32, i32, i32
  }
}

</mosaic_0001>

<bundles_post_ra>
// kernel: tpu_custom_call.1
= control target key start
LH: loop header
LB: loop body
LE: loop exit
PB: predicated region body
PF: predicated region fallthrough
CT: control target
= control target key end

     0   :  { %8 = vsyncpa [#allocation3], 0  ;;  %s4218_s0 = inlined_call_operand.hbm [shape: f32[2,16,16,16], index: 0, kind: input, shape index: {}]   ;;  %s4219_s1 = inlined_call_operand.vmem [shape: f32[144,32], index: 1, kind: input, shape index: {}]   ;;  %s4220_s2 = inlined_call_operand.vmem [shape: f32[1,32], index: 2, kind: input, shape index: {}]   ;;  %s4221_s3 = inlined_call_operand.hbm [shape: f32[2,16,16,32], index: 3, kind: output, shape index: {}]  }
   0x1   :  { %10 = vsyncpa [#allocation3 + $0x1], 0 }
   0x2   :  { %11 = vsyncpa [#allocation4], 0 }
   0x3   :  { %13 = vsyncpa [#allocation4 + $0x1], 0  ;;  %s2662_s12 = smov 0   ;;  %s2664_s13 = smov 0  }
   0x4   :  { %s2666_s14 = smov 0   ;;  %s2668_s15 = smov 0  }
   0x5 LB: > { %s2683_s16 = sadd.s32 4294967295, %s2626_s15   ;;  %s1836_s17 = sadd.s32 4294967294, %s2626_s15   ;;  %s2626_s15 = sphi %s2668_s15, %s4474_s15   ;;  %s2622_s14 = sphi %s2666_s14, %s4473_s14   ;;  %s2618_s13 = sphi %s2664_s13, %s4472_s13   ;;  %s2614_s12 = sphi %s2662_s12, %s4471_s12  }
   0x6   : > { %s2687_s18 = sadd.s32 1, %s2626_s15   ;;  %s26_s19 = sadd.s32 1, %s2622_s14 }
   0x7   : > { %s23_s20 = ssub.s32 %s2626_s15, %s2687_s18  ;;  %p33_p0 = scmp.ne.s32.totalorder %s2622_s14, %s2618_s13 }
   0x8   : > { %p24_p1 = scmp.eq.s32.totalorder %s23_s20, 0  ;;  %p34_p2 = scmp.eq.s32.totalorder %s2626_s15, 0 }
   0x9   : > { %p39_p3 = scmp.ne.s32.totalorder %s2618_s13, %s2614_s12  ;;  %p40_p4 = scmp.eq.s32.totalorder %s2683_s16, 0 }
   0xa   : > { %s2699_s21 = scalar_select %p24_p1, %s2622_s14, %s26_s19  }
   0xb   : > { %p2701_p5 = por %p34_p2, %p33_p0  ;;  %p2705_p6 = por %p40_p4, %p39_p3 }
   0xc   : > { %p105_p7 = scmp.eq.s32.totalorder %s2683_s16, 1  ;;  %p111_p8 = scmp.eq.s32.totalorder %s1836_s17, 1 }
   0xd   : > { %s4307_s23 = scalar_select %p2705_p6, 1, 0 }
   0xe   : > { %p1933_p10 = scmp.lt.s32.totalorder %s2626_s15, 2  ;;  %p2712_p11 = por %p105_p7, %p33_p0 }
   0xf   : > { %p2716_p12 = por %p111_p8, %p39_p3  ;;  %s137_s26 = sand.u32 1, %s2622_s14  }
  0x10   : > { %s4308_s24 = scalar_select %p2712_p11, 1, 0 }
  0x11   : > { %s4309_s25 = scalar_select %p2716_p12, 1, 0 }
  0x12   : > { %s1883_s27 = sshll.u32 %s2626_s15, 12  ;;  %s1839_s28 = sshll.u32 %s137_s26, 8 }
  0x13   : > { %s2725_s4 = scalar_lea.hbm %s4218_s0, %s1883_s27  ;;  %s141_s5 = scalar_lea.vmem [#allocation2], %s1839_s28 }
  0x14   : > { %s148_s6 = sshll.u32 %s141_s5, 4  ;;  %p2729_p13 = pnand %p1933_p10, %p2701_p5  ;;  %s2733_s6 = int_to_ptr.vmem [resolvable:$true] %s148_s6 }
  0x15   : > { %s2735_s8 = scalar_lea.sflag [#allocation3], %s137_s26  ;;  %s2534_s9 = scalar_lea.hbm %s2725_s4, 4096 }
  0x16   : > { %p2535_p0 = scmp.ne.s32.totalorder %s2725_s4, %s2534_s9  ;;  %p2536_p1 = pneg %p2729_p13 }
  0x17   : > { %s2539_s17 = scalar_lea.hbm %s4218_s0, 8192  ;;  %p2540_p4 = scmp.lt.s32.totalorder %s2725_s4, %s4218_s0 }
  0x18   : > { %p2537_p2 = pnand %p2536_p1, %p2535_p0  ;;  %p2541_p5 = scmp.lt.s32.totalorder %s2539_s17, %s2534_s9 }
  0x1a   : > { %p2538_p3 = pneg %p2537_p2  ;;  %p2542_p7 = por %p2541_p5, %p2540_p4 }
  0x1c   : > { %p2543_p8 = pnand %p2542_p7, %p2538_p3 }
  0x1e   : > { %2546 = shalt.err (!%p2543_p8)
}
  0x1f   : > { %s2547_s22 = scalar_lea.vmem %s2733_s6, 4096  ;;  %s2628_s26 = smov [#allocation2]  }
  0x20   : > { %p2548_p10 = scmp.ne.s32.totalorder %s2733_s6, %s2547_s22  ;;  %s2552_s27 = sshll.u32 %s2628_s26, 4  ;;  %s2553_s27 = int_to_ptr.vmem [resolvable:$false] %s2552_s27 }
  0x21   : > { %s2554_s28 = scalar_lea.vmem %s2553_s27, 8192  ;;  %p2555_p2 = scmp.lt.s32.totalorder %s2733_s6, %s2553_s27 }
  0x22   : > { %p2550_p9 = pnand %p2548_p10, %p2536_p1  ;;  %p2556_p12 = scmp.lt.s32.totalorder %s2554_s28, %s2547_s22 }
  0x24   : > { %p2551_p0 = pneg %p2550_p9  ;;  %p2557_p11 = por %p2556_p12, %p2555_p2 }
  0x26   : > { %p2558_p6 = pnand %p2557_p11, %p2551_p0 }
  0x28   : > { %2561 = shalt.err (!%p2558_p6)
}
  0x29   : > { %s2629_s29 = smov 128   ;;  %s2630_s30 = smov 8  }
  0x2a   : > { %1928 = dma.hbm_to_vmem [thread:$0]  (!%p2729_p13), %s2725_s4, 4096, %s2733_s6, %s2735_s8, %s2629_s29, %s2629_s29, %s2630_s30  }
  0x2b   : > { %p1842_p9 = scmp.ge.s32.totalorder %s2626_s15, 1  ;;  %p156_p1 = scmp.lt.s32.totalorder %s2626_s15, 3 }
  0x2d   : > { %p157_p3 = pnand %p1842_p9, %p156_p1 }
  0x2f   : > { %160 = sbr.rel (%p157_p3) target bundleno = 610 (0x262), region = 32 }
  0x34   : > { %s2759_s5 = sand.u32 1, %s2618_s13   ;;  %p4311_p6 = scmp.ne.s32.totalorder %s4307_s23, 0 }
  0x35   : > { %s1843_s9 = sshll.u32 %s2759_s5, 8  ;;  %s163_s10 = scalar_lea.sflag [#allocation3], %s2759_s5 }
  0x36   : > { %s2765_s11 = scalar_lea.vmem [#allocation2], %s1843_s9 }
  0x37   : > { %2605 = dma.done.wait (%p4311_p6), %s163_s10, 4096  }
  0x38   : > { %2607 = vsyncadd (%p4311_p6), %s163_s10, 4294963200  ;;  %v4227_v0 = vmov 0.0   ;;  %v2774_v1 = vld [vmem:[%s2765_s11 + $0x18] sm:$0xff]  ;;  %v2777_v2 = vld [vmem:[%s2765_s11 + $0x20] sm:$0xff]  ;;  %s2632_s23 = smov 16   ;;  %vm348_vm0 = vcmask 1046528  }
  0x39   : > { %1460 = vmatprep.subr.mxu0 %v4227_v0  ;;  %1885 = vmatprep.subr.mxu1 %v4227_v0  ;;  %v2780_v3 = vld [vmem:[%s2765_s11] sm:$0xff]  ;;  %v1989_v4 = vpack.i.bf16 %v2777_v2, %v2774_v1  ;;  %v2787_v6 = vld [vmem:[%s2765_s11 + $0x28] sm:$0xff]  ;;  %v2790_v7 = vld [vmem:[%s2765_s11 + $0x30] sm:$0xff]  ;;  %v355_v9 = vrot.slane %v2774_v1, 1  ;;  %vm1140_vm1 = vcmask 130048   ;;  %v2907_v46 = vrot.slane %v4227_v0, 1 }
  0x3a   : > { %v1979_v5 = vpack.i.bf16 %v2780_v3, %v4227_v0  ;;  %v2793_v8 = vld [vmem:[%s2765_s11 + $0x8] sm:$0xff]  ;;  %v2797_v10 = vld [vmem:[%s2765_s11 + $0x10] sm:$0xff]  ;;  %v1994_v11 = vpack.i.bf16 %v2790_v7, %v2787_v6  ;;  %v2813_v16 = vld [vmem:[%s2765_s11 + $0x38] sm:$0xff]  ;;  %v351_v47 = vrot.slane %v2780_v3, 1  ;;  %v357_v49 = vrot.slane %v2777_v2, 1  ;;  %s2633_s20 = smov 32  }
  0x3b   : > { %1990 = vrot.lane.b32.xlu1 %v1989_v4, %s2632_s23  ;;  %v1984_v12 = vpack.i.bf16 %v2797_v10, %v2793_v8  ;;  %v2806_v13 = vld [vmem:[%s2765_s11 + $0x48] sm:$0xff]  ;;  %v354_v14 = vrot.slane %v2797_v10, 1  ;;  %v2810_v15 = vld [vmem:[%s2765_s11 + $0x50] sm:$0xff]  ;;  %v2816_v17 = vld [vmem:[%s2765_s11 + $0x40] sm:$0xff]  ;;  %4315 = vst [vmem:[#allocation11_spill] sm:$0xff] %v2907_v46  ;;  %v352_v48 = vrot.slane %v2793_v8, 1 }
  0x3c   : > { %1980 = vrot.lane.b32.xlu0 %v1979_v5, %s2632_s23  ;;  %v2004_v19 = vpack.i.bf16 %v2810_v15, %v2806_v13  ;;  %v1999_v20 = vpack.i.bf16 %v2816_v17, %v2813_v16  ;;  %v2832_v21 = vld [vmem:[%s2765_s11 + $0x68] sm:$0xff]  ;;  %v2835_v22 = vld [vmem:[%s2765_s11 + $0x70] sm:$0xff]  ;;  %v2838_v23 = vld [vmem:[%s2765_s11 + $0x58] sm:$0xff]  ;;  %v358_v50 = vrot.slane %v2787_v6, 1  ;;  %v2927_v55 = vsel %vm348_vm0, %v2907_v46, 0.0  ;;  %s2635_s4 = smov 48  }
  0x3d   : > { %v2821_v18 = vsel %vm348_vm0, %v354_v14, %v355_v9  ;;  %4312 = vst [vmem:[#allocation8_spill] sm:$0xff] %v2832_v21  ;;  %4313 = vst [vmem:[#allocation9_spill] sm:$0xff] %v2835_v22  ;;  %v2841_v24 = vld [vmem:[%s2765_s11 + $0x60] sm:$0xff]  ;;  %v2014_v25 = vpack.i.bf16 %v2835_v22, %v2832_v21  ;;  %v2850_v27 = vld [vmem:[%s2765_s11 + $0x88] sm:$0xff]  ;;  %v2932_v56 = vsel %vm348_vm0, %v355_v9, 0.0  ;;  %v2935_v57 = vsel %vm348_vm0, %v351_v47, %v352_v48  ;;  %s2636_s19 = smov 96  }
  0x3e   : > { %1846 = vmatprep.mubr.msk.f32.mxu0 %vm1140_vm1, %v2821_v18  ;;  %v2009_v26 = vpack.i.bf16 %v2841_v24, %v2838_v23  ;;  %v2853_v28 = vld [vmem:[%s2765_s11 + $0x90] sm:$0xff]  ;;  %v2856_v29 = vld [vmem:[%s2765_s11 + $0x78] sm:$0xff]  ;;  %v2859_v30 = vld [vmem:[%s2765_s11 + $0x80] sm:$0xff]  ;;  %4316 = vst [vmem:[#allocation12_spill] sm:$0xff] %v2927_v55  ;;  %v2938_v58 = vsel %vm348_vm0, %v352_v48, 0.0  ;;  %v2941_v59 = vsel %vm348_vm0, %v357_v49, %v358_v50  ;;  %v2944_v60 = vsel %vm348_vm0, %v358_v50, 0.0 }
  0x3f   : > { %1995 = vrot.lane.b32.xlu1 %v1994_v11, %s2632_s23  ;;  %4314 = vst [vmem:[#allocation10_spill] sm:$0xff] %v2856_v29  ;;  %v2862_v31 = vld [vmem:[%s2765_s11 + $0x98] sm:$0xff]  ;;  %v378_v32 = vrot.slane %v2853_v28, 1  ;;  %v2024_v34 = vpack.i.bf16 %v2853_v28, %v2850_v27  ;;  %v2019_v35 = vpack.i.bf16 %v2859_v30, %v2856_v29  ;;  %v2873_v36 = vld [vmem:[%s2765_s11 + $0xa8] sm:$0xff]  ;;  %v2876_v37 = vld [vmem:[%s2765_s11 + $0xb0] sm:$0xff]  ;;  %v360_v61 = vrot.slane %v2790_v7, 1 }
  0x40   : > { %1985 = vrot.lane.b32.xlu0 %v1984_v12, %s2632_s23  ;;  %v4224_v33 = vrot.slane %v2862_v31, 1  ;;  %v2879_v38 = vld [vmem:[%s2765_s11 + $0xa0] sm:$0xff]  ;;  %v2034_v40 = vpack.i.bf16 %v2876_v37, %v2873_v36  ;;  %v2895_v42 = vld [vmem:[%s2765_s11 + $0xc8] sm:$0xff]  ;;  %v2898_v43 = vld [vmem:[%s2765_s11 + $0xd0] sm:$0xff]  ;;  %v361_v62 = vrot.slane %v2813_v16, 1  ;;  %v363_v63 = vrot.slane %v2816_v17, 1 }
  0x41   : > { %v2029_v41 = vpack.i.bf16 %v2879_v38, %v2862_v31  ;;  %v2901_v44 = vld [vmem:[%s2765_s11 + $0xb8] sm:$0xff]  ;;  %v2904_v45 = vld [vmem:[%s2765_s11 + $0xc0] sm:$0xff]  ;;  %v2044_v51 = vpack.i.bf16 %v2898_v43, %v2895_v42  ;;  %v364_v4 = vrot.slane %v2806_v13, 1  ;;  %vm252_vm2 = vcmask 1040384   ;;  %v2955_v9 = vld [vmem:[%s2765_s11 + $0xe8] sm:$0xff]  ;;  %s2637_s22 = smov 80  }
  0x42   : > { %v2884_v39 = vsel %vm348_vm0, %v378_v32, %v4224_v33  ;;  %v2039_v52 = vpack.i.bf16 %v2904_v45, %v2901_v44  ;;  %v2920_v53 = vld [vmem:[%s2765_s11 + $0xd8] sm:$0xff]  ;;  %v2923_v54 = vld [vmem:[%s2765_s11 + $0xe0] sm:$0xff]  ;;  %4317 = vst [vmem:[#allocation13_spill] sm:$0xff] %v2955_v9  ;;  %v2054_v11 = vpack.i.bf16 %v2927_v55, %v2907_v46  ;;  %v2059_v12 = vpack.i.bf16 %v2938_v58, %v2935_v57  ;;  %s2638_s28 = smov 112   ;;  %s4072_s10 = scalar_lea.vmem [#allocation5], %s1843_s9 }
  0x43   : > { %2005 = vrot.lane.b32.xlu1 %v2004_v19, %s2632_s23  ;;  %1862 = vmatprep.mubr.msk.f32.mxu1 %vm1140_vm1, %v2884_v39  ;;  %v2049_v5 = vpack.i.bf16 %v2923_v54, %v2920_v53  ;;  %v2064_v14 = vpack.i.bf16 %v2932_v56, %v2821_v18  ;;  %v2069_v19 = vpack.i.bf16 %v2944_v60, %v2941_v59  ;;  %v1386_v47 = vld [vmem:[%s4219_s1 + $0x78] sm:$0xff]  ;;  %v2993_v48 = vsel %vm348_vm0, %v364_v4, 0.0  ;;  %s1884_s9 = sshll.u32 %s2683_s16, 12  ;;  %s1750_s16 = scalar_lea.sflag [#allocation4], %s2759_s5 }
  0x44   : > { %2000 = vrot.lane.b32.xlu0 %v1999_v20, %s2632_s23  ;;  %v366_v20 = vrot.slane %v2810_v15, 1  ;;  %v2973_v32 = vpack.i.bf16 %v2862_v31, %v2774_v1  ;;  %4320 = vst [vmem:[#allocation16_spill] sm:$0xff] %v2993_v48  ;;  %v4226_v49 = vrot.slane %v2777_v2, 7  ;;  %v2998_v50 = vpack.i.bf16 %v2879_v38, %v2777_v2  ;;  %1461 = vmatpush1.msra.mxu0 %v1386_v47  ;;  %s4169_s7 = scalar_lea.hbm %s4221_s3, %s1884_s9  ;;  %p4468_p12 = scmp.ne.s32.totalorder %s4308_s24, 0 }
  0x45   : > { %1903 = vmatpush1.msra.mxu1 %v1386_v47  ;;  %v286_v33 = vrot.slane %v2873_v36, 7  ;;  %1462 = vmatprep.subr.mxu0 %v4227_v0  ;;  %v4235_v46 = vrot.slane %v2790_v7, 7  ;;  %vm1173_vm3 = vcmask 261120   ;;  %vm1206_vm4 = vcmask 392192   ;;  %s2639_s17 = smov [#allocation5]  }
  0x46   : > { %1886 = vmatprep.subr.mxu1 %v4227_v0  ;;  %vm1239_vm5 = vcmask 523264   ;;  %vm1272_vm6 = vcmask 654336   ;;  %vm1305_vm7 = vcmask 785408   ;;  %vm1338_vm8 = vcmask 916480  }
  0x47   : > { %2015 = vrot.lane.b32.xlu1 %v2014_v25, %s2632_s23  ;;  %v367_v25 = vrot.slane %v2838_v23, 1 }
  0x48   : > { %2010 = vrot.lane.b32.xlu0 %v2009_v26, %s2632_s23  ;;  %v2969_v26 = vpack.i.bf16 %v2853_v28, %v2797_v10 }
  0x49   : > { %v3018_v47 = vsel %vm348_vm0, %v366_v20, %v367_v25  ;;  %v3021_v55 = vsel %vm348_vm0, %v367_v25, 0.0  ;;  %v375_v20 = vrot.slane %v2859_v30, 1  ;;  %v4324_v25 = vrot.slane %v2879_v38, 7 }
  0x4a   : > { %4322 = vst [vmem:[#allocation18_spill] sm:$0xff] %v3018_v47  ;;  %4323 = vst [vmem:[#allocation19_spill] sm:$0xff] %v3021_v55 }
  0x4b   : > { %2025 = vrot.lane.b32.xlu1 %v2024_v34, %s2632_s23  ;;  %v2976_v34 = vsel %vm348_vm0, %v360_v61, %v361_v62  ;;  %v370_v61 = vrot.slane %v2832_v21, 1 }
  0x4c   : > { %2020 = vrot.lane.b32.xlu0 %v2019_v35, %s2632_s23  ;;  %v2979_v35 = vsel %vm348_vm0, %v361_v62, 0.0  ;;  %v372_v62 = vrot.slane %v2835_v22, 1  ;;  %v289_v22 = vrot.slane %v2901_v44, 7 }
  0x4d   : > { %4318 = vst [vmem:[#allocation14_spill] sm:$0xff] %v2979_v35 }
  0x4f   : > { %2035 = vrot.lane.b32.xlu1 %v2034_v40, %s2632_s23  ;;  %v2982_v40 = vsel %vm348_vm0, %v363_v63, %v364_v4  ;;  %v1385_v63 = vld [vmem:[%s4219_s1 + $0x70] sm:$0xff]  ;;  %v373_v4 = vrot.slane %v2856_v29, 1  ;;  %v4328_v29 = vmov 0.0  }
  0x50   : > { %2030 = vrot.lane.b32.xlu0 %v2029_v41, %s2632_s23  ;;  %4319 = vst [vmem:[#allocation15_spill] sm:$0xff] %v2982_v40  ;;  %1463 = vmatpush1.msra.mxu0 %v1385_v63 }
  0x51   : > { %1904 = vmatpush1.msra.mxu1 %v1385_v63  ;;  %v265_v63 = vrot.slane %v2813_v16, 7  ;;  %1464 = vmatprep.subr.mxu0 %v4328_v29 }
  0x52   : > { %1887 = vmatprep.subr.mxu1 %v4328_v29 }
  0x53   : > { %2045 = vrot.lane.b32.xlu1 %v2044_v51, %s2632_s23  ;;  %v262_v51 = vrot.slane %v2787_v6, 7  ;;  %v3066_v21 = vsel %vm252_vm2, %v4235_v46, %v265_v63  ;;  %v2079_v63 = vpack.i.bf16 %v2993_v48, %v2982_v40  ;;  %v2084_v46 = vpack.i.bf16 %v3021_v55, %v3018_v47 }
  0x54   : > { %2040 = vrot.lane.b32.xlu0 %v2039_v52, %s2632_s23  ;;  %v369_v52 = vrot.slane %v2841_v24, 1  ;;  %4331 = vst [vmem:[#allocation25_spill] sm:$0xff] %v3066_v21 }
  0x55   : > { %v3012_v41 = vsel %vm252_vm2, %v4226_v49, %v262_v51  ;;  %v1384_v51 = vld [vmem:[%s4219_s1 + $0x68] sm:$0xff]  ;;  %v3036_v49 = vsel %vm252_vm2, %v4324_v25, %v286_v33  ;;  %v3054_v33 = vsel %vm348_vm0, %v372_v62, %v373_v4  ;;  %v3057_v25 = vsel %vm348_vm0, %v373_v4, 0.0 }
  0x56   : > { %4321 = vst [vmem:[#allocation17_spill] sm:$0xff] %v3012_v41  ;;  %4325 = vst [vmem:[#allocation20_spill] sm:$0xff] %v3036_v49  ;;  %v3044_v0 = vsel %vm348_vm0, %v369_v52, %v370_v61  ;;  %1465 = vmatpush1.msra.mxu0 %v1384_v51  ;;  %v3071_v62 = vpack.i.bf16 %v2901_v44, %v2813_v16  ;;  %1905 = vmatpush1.msra.mxu1 %v1384_v51  ;;  %v381_v52 = vrot.slane %v2879_v38, 1 }
  0x57   : > { %500 = vrot.lane.b32.xlu1 %v2955_v9, %s2632_s23  ;;  %4326 = vst [vmem:[#allocation21_spill] sm:$0xff] %v3044_v0  ;;  %4329 = vst [vmem:[#allocation23_spill] sm:$0xff] %v3054_v33  ;;  %1466 = vmatprep.subr.mxu0 %v4328_v29  ;;  %v2074_v4 = vpack.i.bf16 %v2979_v35, %v2976_v34  ;;  %v4332_v16 = vrot.slane %v2876_v37, 7  ;;  %v2094_v55 = vpack.i.bf16 %v3057_v25, %v3054_v33 }
  0x58   : > { %2050 = vrot.lane.b32.xlu0 %v2049_v5, %s2632_s23  ;;  %v3025_v5 = vpack.i.bf16 %v2873_v36, %v2787_v6  ;;  %v3040_v6 = vpack.i.bf16 %v2876_v37, %v2790_v7  ;;  %4330 = vst [vmem:[#allocation24_spill] sm:$0xff] %v3057_v25  ;;  %1888 = vmatprep.subr.mxu1 %v4328_v29  ;;  %v298_v25 = vrot.slane %v2955_v9, 7  ;;  %v4338_v33 = vrot.slane %v2816_v17, 7  ;;  %s2634_s23 = smov 64  }
  0x59   : > { %v3086_v51 = vsel %vm252_vm2, %v4332_v16, %v289_v22  ;;  %v1382_v22 = vld [vmem:[%s4219_s1 + $0x58] sm:$0xff]  ;;  %v382_v16 = vrot.slane %v2873_v36, 1  ;;  %v1381_v36 = vld [vmem:[%s4219_s1 + $0x50] sm:$0xff] }
  0x5a   : > { %4333 = vst [vmem:[#allocation26_spill] sm:$0xff] %v3086_v51 }
  0x5b   : > { %2060 = vrot.lane.b32.xlu1 %v2059_v12, %s2633_s20  ;;  %v376_v12 = vrot.slane %v2850_v27, 1 }
  0x5c   : > { %2055 = vrot.lane.b32.xlu0 %v2054_v11, %s2633_s20  ;;  %v3047_v11 = vsel %vm348_vm0, %v370_v61, 0.0  ;;  %v1383_v61 = vld [vmem:[%s4219_s1 + $0x60] sm:$0xff] }
  0x5d   : > { %4327 = vst [vmem:[#allocation22_spill] sm:$0xff] %v3047_v11  ;;  %1467 = vmatpush1.msra.mxu0 %v1383_v61  ;;  %v3098_v47 = vsel %vm348_vm0, %v375_v20, %v376_v12  ;;  %v3101_v48 = vsel %vm348_vm0, %v376_v12, 0.0  ;;  %1906 = vmatpush1.msra.mxu1 %v1383_v61  ;;  %v268_v20 = vrot.slane %v2806_v13, 7  ;;  %v292_v12 = vrot.slane %v2895_v42, 7 }
  0x5e   : > { %4334 = vst [vmem:[#allocation27_spill] sm:$0xff] %v3098_v47  ;;  %4335 = vst [vmem:[#allocation28_spill] sm:$0xff] %v3101_v48  ;;  %1468 = vmatprep.subr.mxu0 %v4328_v29  ;;  %1889 = vmatprep.subr.mxu1 %v4328_v29 }
  0x5f   : > { %2070 = vrot.lane.b32.xlu1 %v2069_v19, %s2633_s20  ;;  %v2089_v19 = vpack.i.bf16 %v3047_v11, %v3044_v0  ;;  %v295_v11 = vrot.slane %v2920_v53, 7  ;;  %1469 = vmatpush1.msra.mxu0 %v1382_v22  ;;  %v3134_v40 = vsel %vm252_vm2, %v4338_v33, %v268_v20  ;;  %v4340_v0 = vrot.slane %v2904_v45, 7 }
  0x60   : > { %2065 = vrot.lane.b32.xlu0 %v2064_v14, %s2633_s20  ;;  %v3090_v14 = vpack.i.bf16 %v2904_v45, %v2816_v17  ;;  %1907 = vmatpush1.msra.mxu1 %v1382_v22  ;;  %4339 = vst [vmem:[#allocation30_spill] sm:$0xff] %v3134_v40  ;;  %v2099_v22 = vpack.i.bf16 %v3101_v48, %v3098_v47  ;;  %v384_v33 = vrot.slane %v2876_v37, 1  ;;  %v4344_v20 = vrot.slane %v2898_v43, 7 }
  0x61   : > { %v3139_v35 = vsel %vm252_vm2, %v4340_v0, %v292_v12  ;;  %1470 = vmatprep.subr.mxu0 %v4328_v29  ;;  %1890 = vmatprep.subr.mxu1 %v4328_v29  ;;  %v4258_v0 = vrot.slane %v2810_v15, 7  ;;  %v385_v12 = vrot.slane %v2901_v44, 1 }
  0x62   : > { %4341 = vst [vmem:[#allocation31_spill] sm:$0xff] %v3139_v35  ;;  %1471 = vmatpush1.msra.mxu0 %v1381_v36  ;;  %1908 = vmatpush1.msra.mxu1 %v1381_v36  ;;  %v3170_v36 = vsel %vm348_vm0, %v381_v52, %v382_v16  ;;  %v1379_v52 = vld [vmem:[%s4219_s1 + $0x40] sm:$0xff] }
  0x63   : > { %2080 = vrot.lane.b32.xlu1 %v2079_v63, %s2633_s20  ;;  %v4337_v63 = vrot.slane %v2862_v31, 1  ;;  %1472 = vmatprep.subr.mxu0 %v4328_v29 }
  0x64   : > { %2075 = vrot.lane.b32.xlu0 %v2074_v4, %s2633_s20  ;;  %v3124_v4 = vpack.i.bf16 %v2895_v42, %v2806_v13  ;;  %v4342_v13 = vrot.slane %v2923_v54, 7  ;;  %1891 = vmatprep.subr.mxu1 %v4328_v29 }
  0x65   : > { %v3129_v61 = vsel %vm348_vm0, %v4337_v63, 0.0  ;;  %v3154_v63 = vsel %vm252_vm2, %v4344_v20, %v295_v11  ;;  %v3167_v11 = vpack.i.bf16 %v2898_v43, %v2810_v15  ;;  %v3173_v20 = vsel %vm348_vm0, %v382_v16, 0.0 }
  0x66   : > { %4336 = vst [vmem:[#allocation29_spill] sm:$0xff] %v3124_v4  ;;  %v3144_v4 = vsel %vm252_vm2, %v4342_v13, %v298_v25  ;;  %4345 = vst [vmem:[#allocation33_spill] sm:$0xff] %v3154_v63  ;;  %v1380_v25 = vld [vmem:[%s4219_s1 + $0x48] sm:$0xff]  ;;  %v387_v13 = vrot.slane %v2904_v45, 1  ;;  %v2104_v44 = vpack.i.bf16 %v3129_v61, %v2884_v39  ;;  %v3192_v63 = vpack.i.bf16 %v2920_v53, %v2838_v23 }
  0x67   : > { %4343 = vst [vmem:[#allocation32_spill] sm:$0xff] %v3144_v4  ;;  %2090 = vrot.lane.b32.xlu1 %v2089_v19, %s2633_s20  ;;  %v388_v4 = vrot.slane %v2895_v42, 1  ;;  %4346 = vst [vmem:[#allocation34_spill] sm:$0xff] %v3167_v11  ;;  %v390_v42 = vrot.slane %v2898_v43, 1  ;;  %1473 = vmatpush1.msra.mxu0 %v1380_v25  ;;  %v391_v19 = vrot.slane %v2920_v53, 1  ;;  %v3201_v11 = vsel %vm348_vm0, %v384_v33, %v385_v12  ;;  %v1378_v53 = vld [vmem:[%s4219_s1 + $0x38] sm:$0xff] }
  0x68   : > { %2085 = vrot.lane.b32.xlu0 %v2084_v46, %s2633_s20  ;;  %v271_v46 = vrot.slane %v2838_v23, 7  ;;  %1909 = vmatpush1.msra.mxu1 %v1380_v25  ;;  %4348 = vst [vmem:[#allocation36_spill] sm:$0xff] %v3192_v63  ;;  %v2109_v25 = vpack.i.bf16 %v3173_v20, %v3170_v36  ;;  %v393_v23 = vrot.slane %v2923_v54, 1  ;;  %v3219_v33 = vpack.i.bf16 %v2923_v54, %v2841_v24 }
  0x69   : > { %1474 = vmatprep.subr.mxu0 %v4328_v29  ;;  %1892 = vmatprep.subr.mxu1 %v4328_v29 }
  0x6a   : > { %v3188_v16 = vsel %vm252_vm2, %v4258_v0, %v271_v46  ;;  %v3204_v46 = vsel %vm348_vm0, %v385_v12, 0.0  ;;  %v3211_v0 = vsel %vm348_vm0, %v387_v13, %v388_v4  ;;  %1475 = vmatpush1.msra.mxu0 %v1379_v52  ;;  %1910 = vmatpush1.msra.mxu1 %v1379_v52  ;;  %4351 = vst [vmem:[#allocation39_spill] sm:$0xff] %v3219_v33  ;;  %v1377_v12 = vld [vmem:[%s4219_s1 + $0x30] sm:$0xff] }
  0x6b   : > { %4347 = vst [vmem:[#allocation35_spill] sm:$0xff] %v3188_v16  ;;  %2100 = vrot.lane.b32.xlu1 %v2099_v22, %s2633_s20  ;;  %4349 = vst [vmem:[#allocation37_spill] sm:$0xff] %v3211_v0  ;;  %v394_v22 = vrot.slane %v2955_v9, 1  ;;  %1476 = vmatprep.subr.mxu0 %v4328_v29  ;;  %v3233_v52 = vsel %vm348_vm0, %v390_v42, %v391_v19  ;;  %v3236_v9 = vsel %vm348_vm0, %v391_v19, 0.0  ;;  %v1376_v42 = vld [vmem:[%s4219_s1 + $0x28] sm:$0xff] }
  0x6c   : > { %2095 = vrot.lane.b32.xlu0 %v2094_v55, %s2633_s20  ;;  %v3214_v55 = vsel %vm348_vm0, %v388_v4, 0.0  ;;  %1893 = vmatprep.subr.mxu1 %v4328_v29  ;;  %v2114_v4 = vpack.i.bf16 %v3204_v46, %v3201_v11  ;;  %4352 = vst [vmem:[#allocation40_spill] sm:$0xff] %v3233_v52  ;;  %4353 = vst [vmem:[#allocation41_spill] sm:$0xff] %v3236_v9  ;;  %v2124_v19 = vpack.i.bf16 %v3236_v9, %v3233_v52 }
  0x6d   : > { %4350 = vst [vmem:[#allocation38_spill] sm:$0xff] %v3214_v55  ;;  %1477 = vmatpush1.msra.mxu0 %v1378_v53  ;;  %1911 = vmatpush1.msra.mxu1 %v1378_v53  ;;  %v2119_v13 = vpack.i.bf16 %v3214_v55, %v3211_v0  ;;  %v3239_v53 = vsel %vm348_vm0, %v393_v23, %v394_v22  ;;  %v3242_v33 = vsel %vm348_vm0, %v394_v22, 0.0  ;;  %v1375_v22 = vld [vmem:[%s4219_s1 + $0x20] sm:$0xff]  ;;  %v280_v9 = vrot.slane %v2850_v27, 7 }
  0x6e   : > { %4354 = vst [vmem:[#allocation42_spill] sm:$0xff] %v3239_v53  ;;  %4355 = vst [vmem:[#allocation43_spill] sm:$0xff] %v3242_v33  ;;  %1478 = vmatprep.subr.mxu0 %v4328_v29  ;;  %1894 = vmatprep.subr.mxu1 %v4328_v29  ;;  %v2129_v23 = vpack.i.bf16 %v3242_v33, %v3239_v53  ;;  %v1374_v33 = vld [vmem:[%s4219_s1 + $0x18] sm:$0xff] }
  0x6f   : > { %2110 = vrot.lane.b32.xlu1 %v2109_v25, %s2633_s20  ;;  %v279_v25 = vrot.slane %v2859_v30, 7  ;;  %1479 = vmatpush1.msra.mxu0 %v1377_v12 }
  0x70   : > { %2105 = vrot.lane.b32.xlu0 %v2104_v44, %s2633_s20  ;;  %v255_v44 = vrot.slane %v2780_v3, 7  ;;  %1912 = vmatpush1.msra.mxu1 %v1377_v12 }
  0x71   : > { %1480 = vmatprep.subr.mxu0 %v4328_v29  ;;  %1895 = vmatprep.subr.mxu1 %v4328_v29  ;;  %v3266_v63 = vsel %vm252_vm2, 0.0, %v279_v25 }
  0x72   : > { %v3263_v12 = vsel %vm252_vm2, 0.0, %v255_v44  ;;  %1481 = vmatpush1.msra.mxu0 %v1376_v42  ;;  %1913 = vmatpush1.msra.mxu1 %v1376_v42 }
  0x73   : > { %2120 = vrot.lane.b32.xlu1 %v2119_v13, %s2633_s20  ;;  %4356 = vst [vmem:[#allocation44_spill] sm:$0xff] %v3263_v12  ;;  %v282_v13 = vrot.slane %v2853_v28, 7  ;;  %1482 = vmatprep.subr.mxu0 %v4328_v29  ;;  %v2134_v28 = vpack.i.bf16 %v3266_v63, %v3263_v12  ;;  %v3309_v12 = vsel %vm252_vm2, %v279_v25, %v280_v9  ;;  %v283_v25 = vrot.slane %v2862_v31, 7 }
  0x74   : > { %2115 = vrot.lane.b32.xlu0 %v2114_v4, %s2633_s20  ;;  %v258_v4 = vrot.slane %v2797_v10, 7  ;;  %1896 = vmatprep.subr.mxu1 %v4328_v29  ;;  %v2139_v10 = vpack.i.bf16 %v2859_v30, %v2780_v3  ;;  %v1373_v3 = vld [vmem:[%s4219_s1 + $0x10] sm:$0xff]  ;;  %v2164_v31 = vpack.i.bf16 %v2850_v27, %v2793_v8  ;;  %v4357_v27 = vrot.slane %v2777_v2, 7 }
  0x75   : > { %1483 = vmatpush1.msra.mxu0 %v1375_v22  ;;  %1914 = vmatpush1.msra.mxu1 %v1375_v22  ;;  %v3285_v53 = vsel %vm252_vm2, 0.0, %v282_v13  ;;  %v256_v22 = vrot.slane %v2793_v8, 7  ;;  %v4359_v2 = vpack.i.bf16 %v2884_v39, %v2821_v18  ;;  %v4360_v18 = vrot.slane %v2790_v7, 7 }
  0x76   : > { %v3282_v42 = vsel %vm252_vm2, 0.0, %v258_v4  ;;  %1484 = vmatprep.subr.mxu0 %v4328_v29  ;;  %1897 = vmatprep.subr.mxu1 %v4328_v29  ;;  %v2244_v7 = vpack.i.bf16 %v3170_v36, %v2941_v59 }
  0x77   : > { %2130 = vrot.lane.b32.xlu1 %v2129_v23, %s2633_s20  ;;  %1485 = vmatpush1.msra.mxu0 %v1374_v33  ;;  %v2149_v30 = vpack.i.bf16 %v3285_v53, %v3282_v42  ;;  %v3306_v23 = vsel %vm252_vm2, %v255_v44, %v256_v22  ;;  %v259_v44 = vrot.slane %v2774_v1, 7  ;;  %v2169_v1 = vpack.i.bf16 %v3101_v48, %v2938_v58  ;;  %v4382_v48 = vld [vmem:[#allocation15_spill] sm:$0xff] }
  0x78   : > { %2125 = vrot.lane.b32.xlu0 %v2124_v19, %s2633_s20  ;;  %1915 = vmatpush1.msra.mxu1 %v1374_v33  ;;  %v2144_v33 = vpack.i.bf16 %v3098_v47, %v2935_v57  ;;  %v1372_v19 = vld [vmem:[%s4219_s1 + $0x8] sm:$0xff]  ;;  %v1371_v57 = vld [vmem:[%s4219_s1] sm:$0xff]  ;;  %v2154_v9 = vpack.i.bf16 %v3309_v12, %v3306_v23  ;;  %v3356_v58 = vsel %vm252_vm2, 0.0, %v4357_v27  ;;  %v3389_v39 = vsel %vm252_vm2, 0.0, %v4360_v18 }
  0x79   : > { %1486 = vmatprep.subr.mxu0 %v4328_v29  ;;  %1898 = vmatprep.subr.mxu1 %v4328_v29  ;;  %v3340_v22 = vsel %vm252_vm2, %v258_v4, %v259_v44  ;;  %v4358_v4 = vrot.slane %v2879_v38, 7  ;;  %v2219_v38 = vpack.i.bf16 %v3129_v61, %v2932_v56  ;;  %4361 = vst [vmem:[#allocation45_spill] sm:$0xff] %v3389_v39 }
  0x7a   : > { %1487 = vmatpush1.msra.mxu0 %v1373_v3  ;;  %1916 = vmatpush1.msra.mxu1 %v1373_v3  ;;  %v3343_v3 = vsel %vm252_vm2, %v282_v13, %v283_v25  ;;  %v2294_v27 = vpack.i.bf16 %v3201_v11, %v2976_v34 }
  0x7b   : > { %2140 = vrot.lane.b32.xlu1 %v2139_v10, %s2634_s23  ;;  %1488 = vmatprep.subr.mxu0 %v4328_v29  ;;  %v1388_v10 = vld [vmem:[%s4219_s1 + $0x88] sm:$0xff]  ;;  %v2174_v8 = vpack.i.bf16 %v3343_v3, %v3340_v22  ;;  %v3361_v13 = vsel %vm252_vm2, 0.0, %v4358_v4 }
  0x7c   : > { %2135 = vrot.lane.b32.xlu0 %v2134_v28, %s2635_s4  ;;  %1899 = vmatprep.subr.mxu1 %v4328_v29  ;;  %v1387_v28 = vld [vmem:[%s4219_s1 + $0x80] sm:$0xff] }
  0x7d   : > { %1489 = vmatpush1.msra.mxu0 %v1372_v19  ;;  %1917 = vmatpush1.msra.mxu1 %v1372_v19 }
  0x7e   : > { %1490 = vmatprep.subr.mxu0 %v4328_v29  ;;  %1900 = vmatprep.subr.mxu1 %v4328_v29 }
  0x7f   : > { %2150 = vrot.lane.b32.xlu1 %v2149_v30, %s2636_s19  ;;  %1491 = vmatpush1.msra.mxu0 %v1371_v57 }
  0x80   : > { %2145 = vrot.lane.b32.xlu0 %v2144_v33, %s2637_s22  ;;  %1918 = vmatpush1.msra.mxu1 %v1371_v57  ;;  %v4362_v33 = vrot.slane %v2876_v37, 7  ;;  %v2269_v37 = vpack.i.bf16 %v3173_v20, %v2944_v60 }
  0x81   : > { %1520 = vmatprep.subr.mxu0 %v4328_v29  ;;  %1901 = vmatprep.subr.mxu1 %v4328_v29 }
  0x82   : > { %1521 = vmatpush2.msra.mxu0 %v1388_v10  ;;  %1919 = vmatpush2.msra.mxu1 %v1388_v10  ;;  %v3394_v19 = vsel %vm252_vm2, 0.0, %v4362_v33  ;;  %v4365_v10 = vrot.slane %v2816_v17, 7  ;;  %v2324_v33 = vpack.i.bf16 %v3139_v35, %v3134_v40 }
  0x83   : > { %2160 = vrot.lane.b32.xlu1 %v2969_v26, %s2638_s28  ;;  %1522 = vmatprep.subr.mxu0 %v4328_v29  ;;  %4363 = vst [vmem:[#allocation46_spill] sm:$0xff] %v3394_v19 }
  0x84   : > { %2155 = vrot.lane.b32.xlu0 %v2154_v9, %s2635_s4  ;;  %1902 = vmatprep.subr.mxu1 %v4328_v29  ;;  %v2274_v9 = vpack.i.bf16 %v3086_v51, %v3066_v21  ;;  %v4395_v21 = vld [vmem:[#allocation8_spill] sm:$0xff]  ;;  %v4399_v51 = vld [vmem:[#allocation19_spill] sm:$0xff] }
  0x85   : > { %1523 = vmatpush2.msra.mxu0 %v1387_v28  ;;  %1920 = vmatpush2.msra.mxu1 %v1387_v28 }
  0x87   : > { %2170 = vrot.lane.b32.xlu1 %v2169_v1, %s2637_s22  ;;  %v3429_v1 = vsel %vm252_vm2, 0.0, %v4365_v10  ;;  %v4377_v10 = vrot.slane %v2810_v15, 7  ;;  %v2344_v15 = vpack.i.bf16 %v3211_v0, %v4382_v48 }
  0x88   : > { %2165 = vrot.lane.b32.xlu0 %v2164_v31, %s2634_s23  ;;  %4366 = vst [vmem:[#allocation48_spill] sm:$0xff] %v3429_v1  ;;  %v4367_v31 = vrot.slane %v2904_v45, 7 }
  0x8b   : > { %2180 = vrot.lane.b32.xlu1 %v2149_v30, %s2635_s4  ;;  %v2199_v30 = vpack.i.bf16 %v3361_v13, %v3356_v58 }
  0x8c   : > { %2175 = vrot.lane.b32.xlu0 %v2174_v8, %s2636_s19 }
  0x8f   : > { %2190 = vrot.lane.b32.xlu1 %v2969_v26, %s2634_s23  ;;  %v2224_v26 = vpack.i.bf16 %v3036_v49, %v3012_v41 }
  0x90   : > { %2185 = vrot.lane.b32.xlu0 %v2973_v32, %s2638_s28 }
  0x93   : > { %2200 = vrot.lane.b32.xlu1 %v2199_v30, %s2636_s19 }
  0x94   : > { %2195 = vrot.lane.b32.xlu0 %v4359_v2, %s2637_s22  ;;  %v4373_v2 = vld [vmem:[#allocation14_spill] sm:$0xff] }
  0x97   : > { %2210 = vrot.lane.b32.xlu1 %v2998_v50, %s2638_s28 }
  0x98   : > { %2205 = vrot.lane.b32.xlu0 %v2174_v8, %s2635_s4 }
  0x9b   : > { %2220 = vrot.lane.b32.xlu1 %v2219_v38, %s2637_s22  ;;  %v2319_v38 = vpack.i.bf16 %v3204_v46, %v4373_v2 }
  0x9c   : > { %2215 = vrot.lane.b32.xlu0 %v2973_v32, %s2634_s23  ;;  %v2249_v32 = vpack.i.bf16 %v3394_v19, %v3389_v39 }
  0x9f   : > { %2230 = vrot.lane.b32.xlu1 %v2199_v30, %s2635_s4 }
  0xa0   : > { %2225 = vrot.lane.b32.xlu0 %v2224_v26, %s2636_s19 }
  0xa3   : > { %2240 = vrot.lane.b32.xlu1 %v2998_v50, %s2634_s23 }
  0xa4   : > { %2235 = vrot.lane.b32.xlu0 %v3025_v5, %s2638_s28 }
  0xa7   : > { %2250 = vrot.lane.b32.xlu1 %v2249_v32, %s2636_s19 }
  0xa8   : > { %2245 = vrot.lane.b32.xlu0 %v2244_v7, %s2637_s22 }
  0xab   : > { %2260 = vrot.lane.b32.xlu1 %v3040_v6, %s2638_s28 }
  0xac   : > { %2255 = vrot.lane.b32.xlu0 %v2224_v26, %s2635_s4 }
  0xad   : > { %v3411_v50 = vpop.permute.xlu1 %1990 }
  0xae   : > { %v3413_v57 = vpop.permute.xlu0 %1980 }
  0xaf   : > { %2270 = vrot.lane.b32.xlu1 %v2269_v37, %s2637_s22 }
  0xb0   : > { %2265 = vrot.lane.b32.xlu0 %v3025_v5, %s2634_s23  ;;  %v3434_v5 = vsel %vm252_vm2, 0.0, %v4367_v31  ;;  %v3483_v31 = vsel %vm252_vm2, 0.0, %v4377_v10 }
  0xb1   : > { %v3420_v44 = vpop.permute.xlu1 %1995  ;;  %4368 = vst [vmem:[#allocation49_spill] sm:$0xff] %v3434_v5  ;;  %v2299_v17 = vpack.i.bf16 %v3434_v5, %v3429_v1  ;;  %4378 = vst [vmem:[#allocation56_spill] sm:$0xff] %v3483_v31 }
  0xb2   : > { %4364 = vst [vmem:[#allocation47_spill] sm:$0xff] %v3420_v44  ;;  %v3422_v25 = vpop.permute.xlu0 %1985 }
  0xb3   : > { %2280 = vrot.lane.b32.xlu1 %v2249_v32, %s2635_s4 }
  0xb4   : > { %2275 = vrot.lane.b32.xlu0 %v2274_v9, %s2636_s19 }
  0xb5   : > { %v3436_v28 = vpop.permute.xlu1 %2005 }
  0xb6   : > { %4369 = vst [vmem:[#allocation50_spill] sm:$0xff] %v3436_v28  ;;  %v3438_v8 = vpop.permute.xlu0 %2000 }
  0xb7   : > { %4370 = vst [vmem:[#allocation51_spill] sm:$0xff] %v3438_v8  ;;  %2290 = vrot.lane.b32.xlu1 %v3040_v6, %s2634_s23 }
  0xb8   : > { %2285 = vrot.lane.b32.xlu0 %v3071_v62, %s2638_s28 }
  0xb9   : > { %v3448_v45 = vpop.permute.xlu1 %2015 }
  0xba   : > { %4371 = vst [vmem:[#allocation52_spill] sm:$0xff] %v3448_v45  ;;  %v3450_v4 = vpop.permute.xlu0 %2010 }
  0xbb   : > { %4372 = vst [vmem:[#allocation53_spill] sm:$0xff] %v3450_v4  ;;  %2300 = vrot.lane.b32.xlu1 %v2299_v17, %s2636_s19  ;;  %v4384_v4 = vld [vmem:[#allocation16_spill] sm:$0xff] }
  0xbc   : > { %2295 = vrot.lane.b32.xlu0 %v2294_v27, %s2637_s22 }
  0xbd   : > { %v3454_v30 = vpop.permute.xlu1 %2025 }
  0xbe   : > { %v3456_v6 = vpop.permute.xlu0 %2020 }
  0xbf   : > { %2310 = vrot.lane.b32.xlu1 %v3090_v14, %s2638_s28 }
  0xc0   : > { %2305 = vrot.lane.b32.xlu0 %v2274_v9, %s2635_s4 }
  0xc1   : > { %v3463_v26 = vpop.permute.xlu1 %2035 }
  0xc2   : > { %4374 = vst [vmem:[#allocation14_spill] sm:$0xff] %v3463_v26  ;;  %v3465_v18 = vpop.permute.xlu0 %2030 }
  0xc3   : > { %2320 = vrot.lane.b32.xlu1 %v2319_v38, %s2637_s22 }
  0xc4   : > { %2315 = vrot.lane.b32.xlu0 %v3071_v62, %s2634_s23  ;;  %v4379_v62 = vrot.slane %v2898_v43, 7 }
  0xc5   : > { %v3472_v32 = vpop.permute.xlu1 %2045 }
  0xc6   : > { %4375 = vst [vmem:[#allocation54_spill] sm:$0xff] %v3472_v32  ;;  %v3474_v7 = vpop.permute.xlu0 %2040  ;;  %v3488_v27 = vsel %vm252_vm2, 0.0, %v4379_v62  ;;  %v4383_v62 = vld [vmem:[#allocation34_spill] sm:$0xff] }
  0xc7   : > { %4376 = vst [vmem:[#allocation55_spill] sm:$0xff] %v3474_v7  ;;  %2330 = vrot.lane.b32.xlu1 %v2299_v17, %s2635_s4  ;;  %4380 = vst [vmem:[#allocation57_spill] sm:$0xff] %v3488_v27  ;;  %v4381_v17 = vld [vmem:[#allocation29_spill] sm:$0xff]  ;;  %v2349_v38 = vpack.i.bf16 %v3488_v27, %v3483_v31  ;;  %v2369_v27 = vpack.i.bf16 %v3214_v55, %v4384_v4  ;;  %v274_v7 = vrot.slane %v4395_v21, 7 }
  0xc8   : > { %2325 = vrot.lane.b32.xlu0 %v2324_v33, %s2636_s19 }
  0xc9   : > { %v501_v37 = vpop.permute.xlu1 %500 }
  0xca   : > { %v3478_v9 = vpop.permute.xlu0 %2050 }
  0xcb   : > { %2340 = vrot.lane.b32.xlu1 %v3090_v14, %s2634_s23  ;;  %v2053_v19 = vunpack.i.h.bf16 %v3478_v9  ;;  %v2052_v39 = vunpack.i.l.bf16 %v3478_v9  ;;  %v2018_v9 = vunpack.i.h.bf16 %v3448_v45 }
  0xcc   : > { %2335 = vrot.lane.b32.xlu0 %v4381_v17, %s2638_s28 }
  0xcd   : > { %v3500_v10 = vpop.permute.xlu1 %2060 }
  0xce   : > { %v3498_v47 = vpop.permute.xlu0 %2055 }
  0xcf   : > { %2350 = vrot.lane.b32.xlu1 %v2349_v38, %s2636_s19  ;;  %v2057_v0 = vunpack.i.l.bf16 %v3498_v47 }
  0xd0   : > { %2345 = vrot.lane.b32.xlu0 %v2344_v15, %s2637_s22  ;;  %v4387_v15 = vld [vmem:[#allocation33_spill] sm:$0xff] }
  0xd1   : > { %v3506_v14 = vpop.permute.xlu1 %2070  ;;  %v2374_v40 = vpack.i.bf16 %v4387_v15, %v3188_v16  ;;  %v1170_v45 = vsel %vm1140_vm1, %v4387_v15, %v2052_v39  ;;  %v4408_v15 = vld [vmem:[#allocation13_spill] sm:$0xff] }
  0xd2   : > { %v3504_v43 = vpop.permute.xlu0 %2065 }
  0xd3   : > { %2360 = vrot.lane.b32.xlu1 %v4383_v62, %s2638_s28 }
  0xd4   : > { %2355 = vrot.lane.b32.xlu0 %v2324_v33, %s2635_s4  ;;  %v273_v33 = vrot.slane %v2841_v24, 7  ;;  %v4392_v24 = vld [vmem:[#allocation36_spill] sm:$0xff] }
  0xd5   : > { %v3515_v35 = vpop.permute.xlu1 %2080 }
  0xd6   : > { %v3513_v31 = vpop.permute.xlu0 %2075  ;;  %4386 = vst [vmem:[#allocation34_spill] sm:$0xff] %v3515_v35  ;;  %v3537_v16 = vsel %vm252_vm2, 0.0, %v273_v33 }
  0xd7   : > { %4385 = vst [vmem:[#allocation29_spill] sm:$0xff] %v3513_v31  ;;  %2370 = vrot.lane.b32.xlu1 %v2369_v27, %s2637_s22  ;;  %v4390_v27 = vrot.slane %v2923_v54, 7  ;;  %4391 = vst [vmem:[#allocation59_spill] sm:$0xff] %v3537_v16  ;;  %v4400_v31 = vld [vmem:[#allocation41_spill] sm:$0xff] }
  0xd8   : > { %2365 = vrot.lane.b32.xlu0 %v4381_v17, %s2634_s23 }
  0xd9   : > { %v3524_v28 = vpop.permute.xlu1 %2090  ;;  %v347_v17 = vsel %vm252_vm2, 0.0, %v4390_v27  ;;  %v3551_v27 = vrot.slane %v4328_v29, 7 }
  0xda   : > { %v3522_v32 = vpop.permute.xlu0 %2085  ;;  %4389 = vst [vmem:[#allocation58_spill] sm:$0xff] %v3524_v28  ;;  %v4393_v28 = vld [vmem:[#allocation18_spill] sm:$0xff]  ;;  %v1171_v55 = vsel %vm1140_vm1, %v347_v17, %v2053_v19 }
  0xdb   : > { %4388 = vst [vmem:[#allocation33_spill] sm:$0xff] %v3522_v32  ;;  %2380 = vrot.lane.b32.xlu1 %v2349_v38, %s2635_s4  ;;  %v2399_v38 = vpack.i.bf16 %v347_v17, %v3537_v16  ;;  %v2394_v32 = vpack.i.bf16 %v3233_v52, %v4393_v28  ;;  %v3562_v52 = vld [vmem:[%s2765_s11 + $0xf0] sm:$0xff]  ;;  %v3566_v28 = vsel %vm252_vm2, 0.0, %v3551_v27  ;;  %v2434_v17 = vpack.i.bf16 %v4408_v15, %v4395_v21 }
  0xdc   : > { %2375 = vrot.lane.b32.xlu0 %v2374_v40, %s2636_s19 }
  0xdd   : > { %v3531_v5 = vpop.permute.xlu1 %2100 }
  0xde   : > { %v3529_v1 = vpop.permute.xlu0 %2095 }
  0xdf   : > { %2390 = vrot.lane.b32.xlu1 %v4383_v62, %s2634_s23  ;;  %v4394_v62 = vld [vmem:[#allocation9_spill] sm:$0xff]  ;;  %v2097_v48 = vunpack.i.l.bf16 %v3529_v1 }
  0xe0   : > { %2385 = vrot.lane.b32.xlu0 %v4392_v24, %s2638_s28  ;;  %v4402_v49 = vrot.slane %v4394_v62, 7 }
  0xe1   : > { %v3548_v54 = vpop.permute.xlu1 %2110 }
  0xe2   : > { %v3546_v35 = vpop.permute.xlu0 %2105  ;;  %v340_v41 = vsel %vm252_vm2, 0.0, %v4402_v49 }
  0xe3   : > { %2400 = vrot.lane.b32.xlu1 %v2399_v38, %s2636_s19 }
  0xe4   : > { %2395 = vrot.lane.b32.xlu0 %v2394_v32, %s2637_s22  ;;  %v4398_v32 = vld [vmem:[#allocation39_spill] sm:$0xff] }
  0xe5   : > { %v3559_v16 = vpop.permute.xlu1 %2120 }
  0xe6   : > { %v3557_v8 = vpop.permute.xlu0 %2115  ;;  %4397 = vst [vmem:[#allocation9_spill] sm:$0xff] %v3559_v16  ;;  %v3576_v16 = vsel %vm252_vm2, %v273_v33, %v274_v7 }
  0xe7   : > { %4396 = vst [vmem:[#allocation36_spill] sm:$0xff] %v3557_v8  ;;  %2410 = vrot.lane.b32.xlu1 %v4398_v32, %s2638_s28  ;;  %v2419_v8 = vpack.i.bf16 %v4400_v31, %v4399_v51  ;;  %4401 = vst [vmem:[#allocation8_spill] sm:$0xff] %v3576_v16  ;;  %v4304_v31 = vrot.slane %v3562_v52, 7 }
  0xe8   : > { %2405 = vrot.lane.b32.xlu0 %v2374_v40, %s2635_s4  ;;  %v4404_v40 = vld [vmem:[#allocation32_spill] sm:$0xff] }
  0xe9   : > { %v2131_v26 = vpop.permute.xlu1 %2130  ;;  %v3587_v44 = vpack.i.bf16 %v4404_v40, %v3576_v16  ;;  %v1172_v7 = vsel %vm1140_vm1, %v4404_v40, %v501_v37 }
  0xea   : > { %v3583_v4 = vpop.permute.xlu0 %2125  ;;  %v2133_v51 = vunpack.i.h.bf16 %v2131_v26  ;;  %v2132_v49 = vunpack.i.l.bf16 %v2131_v26 }
  0xeb   : > { %4403 = vst [vmem:[#allocation39_spill] sm:$0xff] %v3583_v4  ;;  %v2128_v33 = vunpack.i.h.bf16 %v3583_v4  ;;  %2420 = vrot.lane.b32.xlu1 %v2419_v8, %s2637_s22  ;;  %v434_v8 = vsel %vm252_vm2, 0.0, %v4304_v31 }
  0xec   : > { %2415 = vrot.lane.b32.xlu0 %v4392_v24, %s2634_s23  ;;  %v3605_v40 = vsel %vm1173_vm3, %v1172_v7, %v2133_v51  ;;  %v3608_v19 = vsel %vm1173_vm3, %v1171_v55, %v2132_v49  ;;  %v4409_v24 = vunpack.i.l.bf16 %v3413_v57  ;;  %v1157_v51 = vsel %vm1140_vm1, %v340_v41, %v2018_v9 }
  0xed   : > { %v3602_v37 = vsel %vm1173_vm3, %v1170_v45, %v2128_v33  ;;  %4406 = vst [vmem:[#allocation60_spill] sm:$0xff] %v3605_v40  ;;  %4407 = vst [vmem:[#allocation61_spill] sm:$0xff] %v3608_v19  ;;  %v2141_v26 = vpop.permute.xlu1 %2140  ;;  %v1190_v49 = vsel %vm1173_vm3, %v1157_v51, %v2097_v48 }
  0xee   : > { %4405 = vst [vmem:[#allocation32_spill] sm:$0xff] %v3602_v37  ;;  %v2136_v39 = vpop.permute.xlu0 %2135  ;;  %v1141_v45 = vsel %vm1140_vm1, %v3566_v28, %v4409_v24  ;;  %v2143_v40 = vunpack.i.h.bf16 %v2141_v26  ;;  %v2142_v16 = vunpack.i.l.bf16 %v2141_v26  ;;  %v4410_v24 = vld [vmem:[#allocation10_spill] sm:$0xff]  ;;  %v4411_v26 = vld [vmem:[#allocation21_spill] sm:$0xff] }
  0xef   : > { %v2138_v7 = vunpack.i.h.bf16 %v2136_v39  ;;  %v2137_v55 = vunpack.i.l.bf16 %v2136_v39  ;;  %v1174_v33 = vsel %vm1173_vm3, %v1141_v45, %v2057_v0  ;;  %2430 = vrot.lane.b32.xlu1 %v2399_v38, %s2635_s4  ;;  %v277_v9 = vrot.slane %v4410_v24, 7  ;;  %v4412_v38 = vld [vmem:[#allocation42_spill] sm:$0xff] }
  0xf0   : > { %2425 = vrot.lane.b32.xlu0 %v3587_v44, %s2636_s19  ;;  %v3628_v45 = vpack.i.bf16 %v434_v8, %v340_v41  ;;  %v2444_v51 = vpack.i.bf16 %v4412_v38, %v4411_v26  ;;  %v3640_v8 = vld [vmem:[%s2765_s11 + $0xf8] sm:$0xff]  ;;  %v4414_v38 = vld [vmem:[#allocation22_spill] sm:$0xff]  ;;  %v2529_v26 = vld [vmem:[%s2765_s11 + $0x68] sm:$0xff] }
  0xf1   : > { %v1223_v21 = vsel %vm1206_vm4, %v1190_v49, %v2138_v7  ;;  %v1207_v31 = vsel %vm1206_vm4, %v1174_v33, %v2137_v55  ;;  %v2151_v19 = vpop.permute.xlu1 %2150  ;;  %v4413_v49 = vrot.slane %v4394_v62, 7 }
  0xf2   : > { %v2146_v39 = vpop.permute.xlu0 %2145  ;;  %v2153_v37 = vunpack.i.h.bf16 %v2151_v19  ;;  %v2152_v4 = vunpack.i.l.bf16 %v2151_v19  ;;  %v1240_v7 = vsel %vm1239_vm5, %v1207_v31, %v2142_v16  ;;  %v1256_v55 = vsel %vm1239_vm5, %v1223_v21, %v2143_v40 }
  0xf3   : > { %v2148_v0 = vunpack.i.h.bf16 %v2146_v39  ;;  %v2147_v48 = vunpack.i.l.bf16 %v2146_v39  ;;  %2440 = vrot.lane.b32.xlu1 %v4398_v32, %s2634_s23  ;;  %v278_v19 = vsel %vm252_vm2, %v4413_v49, %v277_v9  ;;  %v2459_v16 = vpack.i.bf16 %v3562_v52, %v4394_v62 }
  0xf4   : > { %2435 = vrot.lane.b32.xlu0 %v2434_v17, %s2638_s28  ;;  %v2022_v31 = vunpack.i.l.bf16 %v3456_v6  ;;  %v431_v9 = vrot.slane %v3640_v8, 7 }
  0xf5   : > { %v1273_v33 = vsel %vm1272_vm6, %v1240_v7, %v2147_v48  ;;  %v1289_v41 = vsel %vm1272_vm6, %v1256_v55, %v2148_v0  ;;  %v2161_v24 = vpop.permute.xlu1 %2160  ;;  %v2058_v0 = vunpack.i.h.bf16 %v3498_v47  ;;  %v2098_v48 = vunpack.i.h.bf16 %v3529_v1 }
  0xf6   : > { %v2156_v39 = vpop.permute.xlu0 %2155  ;;  %v2163_v32 = vunpack.i.h.bf16 %v2161_v24  ;;  %v2162_v17 = vunpack.i.l.bf16 %v2161_v24  ;;  %v1306_v40 = vsel %vm1305_vm7, %v1273_v33, %v2152_v4  ;;  %v1322_v21 = vsel %vm1305_vm7, %v1289_v41, %v2153_v37  ;;  %v4415_v37 = vld [vmem:[#allocation43_spill] sm:$0xff] }
  0xf7   : > { %2450 = vrot.lane.b32.xlu1 %v3628_v45, %s2636_s19  ;;  %v2158_v55 = vunpack.i.h.bf16 %v2156_v39  ;;  %v2157_v49 = vunpack.i.l.bf16 %v2156_v39  ;;  %v2469_v41 = vpack.i.bf16 %v4415_v37, %v4414_v38  ;;  %v2464_v47 = vpack.i.bf16 %v4408_v15, %v2529_v26 }
  0xf8   : > { %2445 = vrot.lane.b32.xlu0 %v2444_v51, %s2637_s22  ;;  %v1339_v62 = vsel %vm1338_vm8, %v1306_v40, %v2162_v17  ;;  %v1355_v7 = vsel %vm1338_vm8, %v1322_v21, %v2163_v32  ;;  %v4416_v1 = vunpack.i.l.bf16 %v3413_v57  ;;  %v1158_v32 = vsel %vm1140_vm1, %v278_v19, %v2022_v31 }
  0xf9   : > { %v2171_v24 = vpop.permute.xlu1 %2170  ;;  %1525 = vmatmul.mubr.f32.vlgmr.msra.gmra.mxu0 %v1339_v62  ;;  %1605 = vmatmul.mubr.f32.vlgmr.msra.gmra.mxu1 %v1355_v7  ;;  %v4417_v15 = vrot.slane %v3562_v52, 7  ;;  %v435_v17 = vrot.slane %v3562_v52, 1  ;;  %v436_v40 = vrot.slane %v3640_v8, 1 }
  0xfa   : > { %v2166_v51 = vpop.permute.xlu0 %2165  ;;  %1847 = vmatprep.mubr.msk.f32.mxu0 %vm1140_vm1, %v2932_v56  ;;  %1863 = vmatprep.mubr.msk.f32.mxu1 %vm1140_vm1, %v3129_v61  ;;  %v1142_v39 = vsel %vm1140_vm1, %v3551_v27, %v4416_v1  ;;  %v1191_v61 = vsel %vm1173_vm3, %v1158_v32, %v2098_v48  ;;  %v2173_v21 = vunpack.i.h.bf16 %v2171_v24  ;;  %v1983_v32 = vunpack.i.h.bf16 %v3413_v57 }
  0xfb   : > { %v2168_v4 = vunpack.i.h.bf16 %v2166_v51  ;;  %v2167_v33 = vunpack.i.l.bf16 %v2166_v51  ;;  %2460 = vrot.lane.b32.xlu1 %v2459_v16, %s2638_s28  ;;  %v432_v26 = vsel %vm252_vm2, %v4417_v15, %v431_v9  ;;  %v1175_v56 = vsel %vm1173_vm3, %v1142_v39, %v2058_v0  ;;  %v2530_v39 = vld [vmem:[%s2765_s11 + $0x70] sm:$0xff] }
  0xfc   : > { %2455 = vrot.lane.b32.xlu0 %v3587_v44, %s2635_s4  ;;  %v1224_v31 = vsel %vm1206_vm4, %v1191_v61, %v2158_v55  ;;  %v1208_v16 = vsel %vm1206_vm4, %v1175_v56, %v2157_v49  ;;  %v2172_v44 = vunpack.i.l.bf16 %v2171_v24  ;;  %v3685_v51 = vpack.i.bf16 %v432_v26, %v278_v19  ;;  %v2531_v49 = vld [vmem:[%s2765_s11 + $0x78] sm:$0xff] }
  0xfd   : > { %v2181_v62 = vpop.permute.xlu1 %2180  ;;  %v1241_v9 = vsel %vm1239_vm5, %v1208_v16, %v2167_v33  ;;  %v1257_v0 = vsel %vm1239_vm5, %v1224_v31, %v2168_v4  ;;  %v2489_v55 = vpack.i.bf16 %v3562_v52, %v2530_v39  ;;  %v3693_v24 = vpack.i.bf16 %v3640_v8, %v2531_v49  ;;  %v4418_v39 = vld [vmem:[#allocation44_spill] sm:$0xff] }
  0xfe   : > { %v2176_v7 = vpop.permute.xlu0 %2175  ;;  %v2023_v33 = vunpack.i.h.bf16 %v3456_v6  ;;  %v2499_v19 = vpack.i.bf16 %v3566_v28, %v3266_v63  ;;  %v3702_v4 = vsel %vm348_vm0, %v435_v17, %v436_v40  ;;  %v2102_v52 = vunpack.i.l.bf16 %v3531_v5 }
  0xff   : > { %v2178_v48 = vunpack.i.h.bf16 %v2176_v7  ;;  %v2177_v1 = vunpack.i.l.bf16 %v2176_v7  ;;  %2470 = vrot.lane.b32.xlu1 %v2469_v41, %s2637_s22  ;;  %v2062_v41 = vunpack.i.l.bf16 %v3500_v10  ;;  %v1274_v26 = vsel %vm1272_vm6, %v1241_v9, %v2172_v44 }
 0x100   : > { %2465 = vrot.lane.b32.xlu0 %v2464_v47, %s2634_s23  ;;  %v1290_v57 = vsel %vm1272_vm6, %v1257_v0, %v2173_v21  ;;  %v2183_v56 = vunpack.i.h.bf16 %v2181_v62  ;;  %v2182_v6 = vunpack.i.l.bf16 %v2181_v62  ;;  %v1143_v44 = vsel %vm1140_vm1, %v4418_v39, %v1983_v32 }
 0x101   : > { %v2191_v47 = vpop.permute.xlu1 %2190  ;;  %v1307_v17 = vsel %vm1305_vm7, %v1274_v26, %v2177_v1  ;;  %v1323_v7 = vsel %vm1305_vm7, %v1290_v57, %v2178_v48  ;;  %v1159_v21 = vsel %vm1140_vm1, %v3266_v63, %v2023_v33  ;;  %v1176_v0 = vsel %vm1173_vm3, %v1143_v44, %v2062_v41  ;;  %v4419_v1 = vld [vmem:[#allocation23_spill] sm:$0xff] }
 0x102   : > { %v2186_v15 = vpop.permute.xlu0 %2185  ;;  %v2193_v28 = vunpack.i.h.bf16 %v2191_v47  ;;  %v2192_v16 = vunpack.i.l.bf16 %v2191_v47  ;;  %v2494_v48 = vpack.i.bf16 %v3702_v4, %v4419_v1  ;;  %v1209_v32 = vsel %vm1206_vm4, %v1176_v0, %v2182_v6 }
 0x103   : > { %v2188_v61 = vunpack.i.h.bf16 %v2186_v15  ;;  %v2187_v31 = vunpack.i.l.bf16 %v2186_v15  ;;  %2480 = vrot.lane.b32.xlu1 %v3628_v45, %s2635_s4  ;;  %v1192_v45 = vsel %vm1173_vm3, %v1159_v21, %v2102_v52  ;;  %v2103_v21 = vunpack.i.h.bf16 %v3531_v5 }
 0x104   : > { %2475 = vrot.lane.b32.xlu0 %v3685_v51, %s2636_s19  ;;  %v1225_v63 = vsel %vm1206_vm4, %v1192_v45, %v2183_v56  ;;  %v1242_v41 = vsel %vm1239_vm5, %v1209_v32, %v2192_v16 }
 0x105   : > { %v1340_v62 = vsel %vm1338_vm8, %v1307_v17, %v2187_v31  ;;  %v1356_v9 = vsel %vm1338_vm8, %v1323_v7, %v2188_v61  ;;  %v2201_v49 = vpop.permute.xlu1 %2200  ;;  %v1258_v52 = vsel %vm1239_vm5, %v1225_v63, %v2193_v28  ;;  %v2532_v31 = vld [vmem:[%s2765_s11 + $0x80] sm:$0xff]  ;;  %v3742_v28 = vsel %vm348_vm0, %v436_v40, 0.0 }
 0x106   : > { %v2196_v47 = vpop.permute.xlu0 %2195  ;;  %1530 = vmatmul.mubr.f32.gmra.mxu0 %v1340_v62  ;;  %1610 = vmatmul.mubr.f32.gmra.mxu1 %v1356_v9  ;;  %v2203_v26 = vunpack.i.h.bf16 %v2201_v49  ;;  %v2202_v57 = vunpack.i.l.bf16 %v2201_v49  ;;  %v2027_v7 = vunpack.i.l.bf16 %v3454_v30 }
 0x107   : > { %v2198_v33 = vunpack.i.h.bf16 %v2196_v47  ;;  %v2197_v15 = vunpack.i.l.bf16 %v2196_v47  ;;  %1848 = vmatprep.mubr.msk.f32.mxu0 %vm1140_vm1, %v2941_v59  ;;  %1864 = vmatprep.mubr.msk.f32.mxu1 %vm1140_vm1, %v3170_v36  ;;  %v2509_v36 = vpack.i.bf16 %v4328_v29, %v2532_v31  ;;  %v2063_v29 = vunpack.i.h.bf16 %v3500_v10  ;;  %v4420_v47 = vld [vmem:[#allocation24_spill] sm:$0xff] }
 0x108   : > { %2490 = vrot.lane.b32.xlu1 %v2489_v55, %s2634_s23  ;;  %2485 = vrot.lane.b32.xlu0 %v3693_v24, %s2638_s28  ;;  %v1987_v55 = vunpack.i.l.bf16 %v3422_v25  ;;  %v1160_v10 = vsel %vm1140_vm1, %v3309_v12, %v2027_v7  ;;  %v2107_v31 = vunpack.i.l.bf16 %v3546_v35 }
 0x109   : > { %v1275_v56 = vsel %vm1272_vm6, %v1242_v41, %v2197_v15  ;;  %v1291_v6 = vsel %vm1272_vm6, %v1258_v52, %v2198_v33  ;;  %v2211_v61 = vpop.permute.xlu1 %2210 }
 0x10a   : > { %v2206_v59 = vpop.permute.xlu0 %2205  ;;  %v2213_v17 = vunpack.i.h.bf16 %v2211_v61  ;;  %v2212_v16 = vunpack.i.l.bf16 %v2211_v61  ;;  %v1308_v39 = vsel %vm1305_vm7, %v1275_v56, %v2202_v57  ;;  %v1324_v44 = vsel %vm1305_vm7, %v1291_v6, %v2203_v26 }
 0x10b   : > { %v2208_v62 = vunpack.i.h.bf16 %v2206_v59  ;;  %v2207_v9 = vunpack.i.l.bf16 %v2206_v59  ;;  %v1144_v5 = vsel %vm1140_vm1, %v3306_v23, %v1987_v55  ;;  %v2524_v56 = vpack.i.bf16 %v3551_v27, %v3309_v12 }
 0x10c   : > { %2500 = vrot.lane.b32.xlu1 %v2499_v19, %s2636_s19  ;;  %2495 = vrot.lane.b32.xlu0 %v2494_v48, %s2637_s22  ;;  %v1341_v8 = vsel %vm1338_vm8, %v1308_v39, %v2212_v16  ;;  %v1357_v40 = vsel %vm1338_vm8, %v1324_v44, %v2213_v17  ;;  %v2519_v48 = vpack.i.bf16 %v3742_v28, %v4420_v47  ;;  %v1988_v6 = vunpack.i.h.bf16 %v3422_v25 }
 0x10d   : > { %v2221_v0 = vpop.permute.xlu1 %2220  ;;  %1535 = vmatmul.mubr.f32.gmra.mxu0 %v1341_v8  ;;  %1615 = vmatmul.mubr.f32.gmra.mxu1 %v1357_v40  ;;  %v1177_v32 = vsel %vm1173_vm3, %v1144_v5, %v2063_v29  ;;  %v2028_v61 = vunpack.i.h.bf16 %v3454_v30  ;;  %v2067_v59 = vunpack.i.l.bf16 %v3504_v43  ;;  %v2533_v29 = vld [vmem:[%s2765_s11 + $0x88] sm:$0xff] }
 0x10e   : > { %v2216_v45 = vpop.permute.xlu0 %2215  ;;  %1849 = vmatprep.mubr.msk.f32.mxu0 %vm1140_vm1, %v2944_v60  ;;  %1865 = vmatprep.mubr.msk.f32.mxu1 %vm1140_vm1, %v3173_v20  ;;  %v1193_v60 = vsel %vm1173_vm3, %v1160_v10, %v2103_v21  ;;  %v1210_v63 = vsel %vm1206_vm4, %v1177_v32, %v2207_v9  ;;  %v2223_v23 = vunpack.i.h.bf16 %v2221_v0  ;;  %v2222_v33 = vunpack.i.l.bf16 %v2221_v0 }
 0x10f   : > { %v2218_v19 = vunpack.i.h.bf16 %v2216_v45  ;;  %v2217_v49 = vunpack.i.l.bf16 %v2216_v45  ;;  %v1226_v20 = vsel %vm1206_vm4, %v1193_v60, %v2208_v62  ;;  %v1145_v21 = vsel %vm1140_vm1, %v3282_v42, %v1988_v6 }
 0x110   : > { %2510 = vrot.lane.b32.xlu1 %v2509_v36, %s2638_s28  ;;  %2505 = vrot.lane.b32.xlu0 %v3685_v51, %s2635_s4  ;;  %v1161_v8 = vsel %vm1140_vm1, %v3285_v53, %v2028_v61  ;;  %v1178_v9 = vsel %vm1173_vm3, %v1145_v21, %v2067_v59  ;;  %v2072_v21 = vunpack.i.l.bf16 %v3506_v14 }
 0x111   : > { %v2231_v15 = vpop.permute.xlu1 %2230  ;;  %v1243_v52 = vsel %vm1239_vm5, %v1210_v63, %v2217_v49  ;;  %v1259_v26 = vsel %vm1239_vm5, %v1226_v20, %v2218_v19  ;;  %v1194_v0 = vsel %vm1173_vm3, %v1161_v8, %v2107_v31  ;;  %v2112_v8 = vunpack.i.l.bf16 %v3548_v54 }
 0x112   : > { %v2226_v41 = vpop.permute.xlu0 %2225  ;;  %v1276_v16 = vsel %vm1272_vm6, %v1243_v52, %v2222_v33  ;;  %v2233_v55 = vunpack.i.h.bf16 %v2231_v15  ;;  %v2232_v7 = vunpack.i.l.bf16 %v2231_v15  ;;  %v1992_v52 = vunpack.i.l.bf16 %v3411_v50 }
 0x113   : > { %v2228_v51 = vunpack.i.h.bf16 %v2226_v41  ;;  %v2227_v57 = vunpack.i.l.bf16 %v2226_v41 }
 0x114   : > { %2515 = vrot.lane.b32.xlu0 %v3693_v24, %s2634_s23  ;;  %2520 = vrot.lane.b32.xlu1 %v2519_v48, %s2637_s22  ;;  %v1292_v24 = vsel %vm1272_vm6, %v1259_v26, %v2223_v23  ;;  %v1227_v49 = vsel %vm1206_vm4, %v1194_v0, %v2233_v55  ;;  %v1211_v5 = vsel %vm1206_vm4, %v1178_v9, %v2232_v7  ;;  %s1763_s23 = sshll.u32 %s4072_s10, 4  ;;  %s4171_s23 = int_to_ptr.vmem [resolvable:$true] %s1763_s23 }
 0x115   : > { %v2241_v36 = vpop.permute.xlu1 %2240  ;;  %v1309_v25 = vsel %vm1305_vm7, %v1276_v16, %v2227_v57  ;;  %v1325_v30 = vsel %vm1305_vm7, %v1292_v24, %v2228_v51  ;;  %v2068_v51 = vunpack.i.h.bf16 %v3504_v43  ;;  %v2108_v57 = vunpack.i.h.bf16 %v3546_v35  ;;  %s2562_s8 = scalar_lea.vmem %s4171_s23, 4096 }
 0x116   : > { %v2236_v17 = vpop.permute.xlu0 %2235  ;;  %v2243_v12 = vunpack.i.h.bf16 %v2241_v36  ;;  %v2242_v27 = vunpack.i.l.bf16 %v2241_v36  ;;  %v1146_v35 = vsel %vm1140_vm1, %v3340_v22, %v1992_v52  ;;  %p2563_p11 = scmp.ne.s32.totalorder %s4171_s23, %s2562_s8 }
 0x117   : > { %v2238_v39 = vunpack.i.h.bf16 %v2236_v17  ;;  %v2237_v44 = vunpack.i.l.bf16 %v2236_v17  ;;  %v1179_v24 = vsel %vm1173_vm3, %v1146_v35, %v2068_v51  ;;  %v4424_v35 = vld [vmem:[#allocation14_spill] sm:$0xff] }
 0x118   : > { %2525 = vrot.lane.b32.xlu0 %v2524_v56, %s2636_s19  ;;  %1077 = vrot.lane.b32.xlu1 %v2533_v29, %s2638_s28  ;;  %v1244_v53 = vsel %vm1239_vm5, %v1211_v5, %v2242_v27  ;;  %v1260_v48 = vsel %vm1239_vm5, %v1227_v49, %v2243_v12  ;;  %v2033_v29 = vunpack.i.h.bf16 %v3465_v18  ;;  %p2564_p13 = pnand %p2563_p11, %p4468_p12  ;;  %s2566_s19 = sshll.u32 %s2639_s17, 4  ;;  %s2567_s19 = int_to_ptr.vmem [resolvable:$false] %s2566_s19 }
 0x119   : > { %v1342_v40 = vsel %vm1338_vm8, %v1309_v25, %v2237_v44  ;;  %v1358_v62 = vsel %vm1338_vm8, %v1325_v30, %v2238_v39  ;;  %v2251_v45 = vpop.permute.xlu1 %2250  ;;  %s2568_s22 = scalar_lea.vmem %s2567_s19, 8192  ;;  %p2569_p5 = scmp.lt.s32.totalorder %s4171_s23, %s2567_s19 }
 0x11a   : > { %v2246_v19 = vpop.permute.xlu0 %2245  ;;  %1540 = vmatmul.mubr.f32.gmra.mxu0 %v1342_v40  ;;  %1620 = vmatmul.mubr.f32.gmra.mxu1 %v1358_v62  ;;  %v2253_v32 = vunpack.i.h.bf16 %v2251_v45  ;;  %v2252_v60 = vunpack.i.l.bf16 %v2251_v45  ;;  %p2565_p4 = pneg %p2564_p13  ;;  %p2570_p7 = scmp.lt.s32.totalorder %s2568_s22, %s2562_s8 }
 0x11b   : > { %v2248_v42 = vunpack.i.h.bf16 %v2246_v19  ;;  %v2247_v10 = vunpack.i.l.bf16 %v2246_v19  ;;  %1850 = vmatprep.mubr.msk.f32.mxu0 %vm1140_vm1, %v2976_v34  ;;  %1866 = vmatprep.mubr.msk.f32.mxu1 %vm1140_vm1, %v3201_v11  ;;  %v2032_v34 = vunpack.i.l.bf16 %v3465_v18 }
 0x11c   : > { %p2571_p8 = por %p2570_p7, %p2569_p5 }
 0x11d   : > { %v1277_v20 = vsel %vm1272_vm6, %v1244_v53, %v2247_v10  ;;  %v1293_v63 = vsel %vm1272_vm6, %v1260_v48, %v2248_v42  ;;  %v2261_v23 = vpop.permute.xlu1 %2260  ;;  %v1162_v43 = vsel %vm1140_vm1, %v3343_v3, %v2032_v34  ;;  %v1993_v3 = vunpack.i.h.bf16 %v3411_v50  ;;  %v4421_v34 = vld [vmem:[#allocation15_spill] sm:$0xff] }
 0x11e   : > { %v2256_v33 = vpop.permute.xlu0 %2255  ;;  %v2263_v15 = vunpack.i.h.bf16 %v2261_v23  ;;  %v2262_v41 = vunpack.i.l.bf16 %v2261_v23  ;;  %v1310_v11 = vsel %vm1305_vm7, %v1277_v20, %v2252_v60  ;;  %v1326_v26 = vsel %vm1305_vm7, %v1293_v63, %v2253_v32  ;;  %p2572_p10 = pnand %p2571_p8, %p2565_p4 }
 0x11f   : > { %v2258_v61 = vunpack.i.h.bf16 %v2256_v33  ;;  %v2257_v59 = vunpack.i.l.bf16 %v2256_v33  ;;  %v1195_v55 = vsel %vm1173_vm3, %v1162_v43, %v2108_v57  ;;  %v1147_v53 = vsel %vm1140_vm1, %v3356_v58, %v1993_v3  ;;  %v4425_v3 = vld [vmem:[#allocation16_spill] sm:$0xff] }
 0x120   : > { %v1343_v56 = vsel %vm1338_vm8, %v1310_v11, %v2262_v41  ;;  %v1359_v6 = vsel %vm1338_vm8, %v1326_v26, %v2263_v15  ;;  %v1163_v48 = vsel %vm1140_vm1, %v3361_v13, %v2033_v29  ;;  %v1180_v20 = vsel %vm1173_vm3, %v1147_v53, %v2072_v21  ;;  %v4422_v13 = vld [vmem:[#allocation37_spill] sm:$0xff]  ;;  %v4426_v29 = vld [vmem:[#allocation38_spill] sm:$0xff]  ;;  %v4428_v21 = vld [vmem:[#allocation20_spill] sm:$0xff] }
 0x121   : > { %v2271_v31 = vpop.permute.xlu1 %2270  ;;  %1545 = vmatmul.mubr.f32.gmra.mxu0 %v1343_v56  ;;  %1625 = vmatmul.mubr.f32.gmra.mxu1 %v1359_v6  ;;  %v1228_v7 = vsel %vm1206_vm4, %v1195_v55, %v2258_v61  ;;  %v1212_v39 = vsel %vm1206_vm4, %v1179_v24, %v2257_v59  ;;  %v1196_v63 = vsel %vm1173_vm3, %v1163_v48, %v2112_v8  ;;  %v2037_v43 = vunpack.i.l.bf16 %v4424_v35 }
 0x122   : > { %v2266_v36 = vpop.permute.xlu0 %2265  ;;  %1851 = vmatprep.mubr.msk.f32.mxu0 %vm1140_vm1, %v4373_v2  ;;  %1867 = vmatprep.mubr.msk.f32.mxu1 %vm1140_vm1, %v3204_v46  ;;  %v2273_v44 = vunpack.i.h.bf16 %v2271_v31  ;;  %v2272_v12 = vunpack.i.l.bf16 %v2271_v31  ;;  %v2038_v48 = vunpack.i.h.bf16 %v4424_v35 }
 0x123   : > { %v2268_v17 = vunpack.i.h.bf16 %v2266_v36  ;;  %v2267_v16 = vunpack.i.l.bf16 %v2266_v36  ;;  %v1164_v8 = vsel %vm1140_vm1, %v4428_v21, %v2037_v43  ;;  %v4435_v21 = vld [vmem:[#allocation51_spill] sm:$0xff] }
 0x125   : > { %v2281_v2 = vpop.permute.xlu1 %2280  ;;  %v1245_v46 = vsel %vm1239_vm5, %v1212_v39, %v2267_v16  ;;  %v1261_v25 = vsel %vm1239_vm5, %v1228_v7, %v2268_v17  ;;  %v4423_v17 = vld [vmem:[#allocation47_spill] sm:$0xff]  ;;  %v2073_v7 = vunpack.i.h.bf16 %v3506_v14  ;;  %v2113_v39 = vunpack.i.h.bf16 %v3548_v54  ;;  %v4427_v14 = vld [vmem:[#allocation17_spill] sm:$0xff] }
 0x126   : > { %v2276_v27 = vpop.permute.xlu0 %2275  ;;  %v1278_v9 = vsel %vm1272_vm6, %v1245_v46, %v2272_v12  ;;  %v1294_v0 = vsel %vm1272_vm6, %v1261_v25, %v2273_v44  ;;  %v2283_v45 = vunpack.i.h.bf16 %v2281_v2  ;;  %v2282_v19 = vunpack.i.l.bf16 %v2281_v2 }
 0x127   : > { %v2278_v22 = vunpack.i.h.bf16 %v2276_v27  ;;  %v2277_v30 = vunpack.i.l.bf16 %v2276_v27  ;;  %v1997_v16 = vunpack.i.l.bf16 %v4423_v17  ;;  %v1998_v53 = vunpack.i.h.bf16 %v4423_v17 }
 0x128   : > { %v1213_v15 = vsel %vm1206_vm4, %v1180_v20, %v2282_v19  ;;  %v1229_v41 = vsel %vm1206_vm4, %v1196_v63, %v2283_v45  ;;  %v4430_v20 = vld [vmem:[#allocation36_spill] sm:$0xff] }
 0x129   : > { %v2291_v40 = vpop.permute.xlu1 %2290  ;;  %v1311_v50 = vsel %vm1305_vm7, %v1278_v9, %v2277_v30  ;;  %v1327_v18 = vsel %vm1305_vm7, %v1294_v0, %v2278_v22  ;;  %v1148_v54 = vsel %vm1140_vm1, %v4427_v14, %v1997_v16  ;;  %v2117_v63 = vunpack.i.l.bf16 %v4430_v20 }
 0x12a   : > { %v2286_v62 = vpop.permute.xlu0 %2285  ;;  %v2293_v42 = vunpack.i.h.bf16 %v2291_v40  ;;  %v2292_v10 = vunpack.i.l.bf16 %v2291_v40  ;;  %v1181_v40 = vsel %vm1173_vm3, %v1148_v54, %v2073_v7 }
 0x12b   : > { %v2288_v49 = vunpack.i.h.bf16 %v2286_v62  ;;  %v2287_v5 = vunpack.i.l.bf16 %v2286_v62  ;;  %v1197_v62 = vsel %vm1173_vm3, %v1164_v8, %v2113_v39  ;;  %v2002_v8 = vunpack.i.l.bf16 %v4435_v21 }
 0x12c   : > { %v1246_v11 = vsel %vm1239_vm5, %v1213_v15, %v2292_v10  ;;  %v1262_v26 = vsel %vm1239_vm5, %v1229_v41, %v2293_v42 }
 0x12d   : > { %v1344_v32 = vsel %vm1338_vm8, %v1311_v50, %v2287_v5  ;;  %v1360_v60 = vsel %vm1338_vm8, %v1327_v18, %v2288_v49  ;;  %v2301_v23 = vpop.permute.xlu1 %2300 }
 0x12e   : > { %v2296_v33 = vpop.permute.xlu0 %2295  ;;  %1550 = vmatmul.mubr.f32.gmra.mxu0 %v1344_v32  ;;  %1630 = vmatmul.mubr.f32.gmra.mxu1 %v1360_v60  ;;  %v2303_v51 = vunpack.i.h.bf16 %v2301_v23  ;;  %v2302_v57 = vunpack.i.l.bf16 %v2301_v23  ;;  %v4429_v32 = vld [vmem:[#allocation29_spill] sm:$0xff] }
 0x12f   : > { %v2298_v58 = vunpack.i.h.bf16 %v2296_v33  ;;  %v2297_v52 = vunpack.i.l.bf16 %v2296_v33  ;;  %1852 = vmatprep.mubr.msk.f32.mxu0 %vm1140_vm1, %v4421_v34  ;;  %1868 = vmatprep.mubr.msk.f32.mxu1 %vm1140_vm1, %v4422_v13  ;;  %v2077_v60 = vunpack.i.l.bf16 %v4429_v32 }
 0x131   : > { %v1279_v56 = vsel %vm1272_vm6, %v1246_v11, %v2297_v52  ;;  %v1295_v6 = vsel %vm1272_vm6, %v1262_v26, %v2298_v58  ;;  %v2311_v61 = vpop.permute.xlu1 %2310 }
 0x132   : > { %v2306_v59 = vpop.permute.xlu0 %2305  ;;  %v2313_v31 = vunpack.i.h.bf16 %v2311_v61  ;;  %v2312_v36 = vunpack.i.l.bf16 %v2311_v61  ;;  %v1312_v24 = vsel %vm1305_vm7, %v1279_v56, %v2302_v57  ;;  %v1328_v55 = vsel %vm1305_vm7, %v1295_v6, %v2303_v51  ;;  %v4431_v56 = vld [vmem:[#allocation45_spill] sm:$0xff]  ;;  %v4432_v61 = vld [vmem:[#allocation46_spill] sm:$0xff] }
 0x133   : > { %v2308_v2 = vunpack.i.h.bf16 %v2306_v59  ;;  %v2307_v27 = vunpack.i.l.bf16 %v2306_v59  ;;  %v1149_v6 = vsel %vm1140_vm1, %v4431_v56, %v1998_v53  ;;  %v1165_v59 = vsel %vm1140_vm1, %v4432_v61, %v2038_v48 }
 0x134   : > { %v1345_v44 = vsel %vm1338_vm8, %v1312_v24, %v2312_v36  ;;  %v1361_v12 = vsel %vm1338_vm8, %v1328_v55, %v2313_v31  ;;  %v1182_v17 = vsel %vm1173_vm3, %v1149_v6, %v2077_v60  ;;  %v1198_v16 = vsel %vm1173_vm3, %v1165_v59, %v2117_v63  ;;  %v4437_v60 = vld [vmem:[#allocation19_spill] sm:$0xff]  ;;  %v4438_v63 = vld [vmem:[#allocation41_spill] sm:$0xff] }
 0x135   : > { %v2321_v46 = vpop.permute.xlu1 %2320  ;;  %1555 = vmatmul.mubr.f32.gmra.mxu0 %v1345_v44  ;;  %1635 = vmatmul.mubr.f32.gmra.mxu1 %v1361_v12  ;;  %v1230_v9 = vsel %vm1206_vm4, %v1197_v62, %v2308_v2  ;;  %v1214_v0 = vsel %vm1206_vm4, %v1181_v40, %v2307_v27  ;;  %v4433_v44 = vld [vmem:[#allocation18_spill] sm:$0xff]  ;;  %v4434_v12 = vld [vmem:[#allocation40_spill] sm:$0xff]  ;;  %v4436_v40 = vld [vmem:[#allocation55_spill] sm:$0xff]  ;;  %v2003_v61 = vunpack.i.h.bf16 %v4435_v21 }
 0x136   : > { %v2316_v25 = vpop.permute.xlu0 %2315  ;;  %1853 = vmatprep.mubr.msk.f32.mxu0 %vm1140_vm1, %v4425_v3  ;;  %1869 = vmatprep.mubr.msk.f32.mxu1 %vm1140_vm1, %v4426_v29  ;;  %v2323_v45 = vunpack.i.h.bf16 %v2321_v46  ;;  %v2322_v19 = vunpack.i.l.bf16 %v2321_v46  ;;  %v2042_v62 = vunpack.i.l.bf16 %v4436_v40  ;;  %v2043_v59 = vunpack.i.h.bf16 %v4436_v40 }
 0x137   : > { %v2318_v22 = vunpack.i.h.bf16 %v2316_v25  ;;  %v2317_v30 = vunpack.i.l.bf16 %v2316_v25 }
 0x139   : > { %v2331_v49 = vpop.permute.xlu1 %2330  ;;  %v1247_v42 = vsel %vm1239_vm5, %v1214_v0, %v2317_v30  ;;  %v1263_v10 = vsel %vm1239_vm5, %v1230_v9, %v2318_v22 }
 0x13a   : > { %v2326_v5 = vpop.permute.xlu0 %2325  ;;  %v1280_v15 = vsel %vm1272_vm6, %v1247_v42, %v2322_v19  ;;  %v1296_v41 = vsel %vm1272_vm6, %v1263_v10, %v2323_v45  ;;  %v2333_v58 = vunpack.i.h.bf16 %v2331_v49  ;;  %v2332_v52 = vunpack.i.l.bf16 %v2331_v49 }
 0x13b   : > { %v2328_v50 = vunpack.i.h.bf16 %v2326_v5  ;;  %v2327_v18 = vunpack.i.l.bf16 %v2326_v5  ;;  %v2078_v45 = vunpack.i.h.bf16 %v4429_v32  ;;  %v2118_v19 = vunpack.i.h.bf16 %v4430_v20  ;;  %v4439_v32 = vld [vmem:[#allocation25_spill] sm:$0xff] }
 0x13c   : > { %v1231_v24 = vsel %vm1206_vm4, %v1198_v16, %v2333_v58  ;;  %v1215_v55 = vsel %vm1206_vm4, %v1182_v17, %v2332_v52  ;;  %v1150_v20 = vsel %vm1140_vm1, %v4439_v32, %v2002_v8  ;;  %v4442_v17 = vld [vmem:[#allocation9_spill] sm:$0xff] }
 0x13d   : > { %v2341_v23 = vpop.permute.xlu1 %2340  ;;  %v1313_v51 = vsel %vm1305_vm7, %v1280_v15, %v2327_v18  ;;  %v1329_v57 = vsel %vm1305_vm7, %v1296_v41, %v2328_v50  ;;  %v1183_v15 = vsel %vm1173_vm3, %v1150_v20, %v2078_v45  ;;  %v2122_v16 = vunpack.i.l.bf16 %v4442_v17 }
 0x13e   : > { %v2336_v33 = vpop.permute.xlu0 %2335  ;;  %v2343_v11 = vunpack.i.h.bf16 %v2341_v23  ;;  %v2342_v26 = vunpack.i.l.bf16 %v2341_v23  ;;  %v4440_v23 = vld [vmem:[#allocation26_spill] sm:$0xff] }
 0x13f   : > { %v2338_v34 = vunpack.i.h.bf16 %v2336_v33  ;;  %v2337_v13 = vunpack.i.l.bf16 %v2336_v33  ;;  %v1166_v33 = vsel %vm1140_vm1, %v4440_v23, %v2042_v62  ;;  %v4447_v23 = vld [vmem:[#allocation50_spill] sm:$0xff] }
 0x140   : > { %v1248_v2 = vsel %vm1239_vm5, %v1215_v55, %v2342_v26  ;;  %v1264_v27 = vsel %vm1239_vm5, %v1231_v24, %v2343_v11  ;;  %v1199_v41 = vsel %vm1173_vm3, %v1166_v33, %v2118_v19  ;;  %v2007_v33 = vunpack.i.l.bf16 %v4447_v23 }
 0x141   : > { %v1346_v31 = vsel %vm1338_vm8, %v1313_v51, %v2337_v13  ;;  %v1362_v36 = vsel %vm1338_vm8, %v1329_v57, %v2338_v34  ;;  %v2351_v35 = vpop.permute.xlu1 %2350 }
 0x142   : > { %v2346_v43 = vpop.permute.xlu0 %2345  ;;  %1560 = vmatmul.mubr.f32.gmra.mxu0 %v1346_v31  ;;  %1640 = vmatmul.mubr.f32.gmra.mxu1 %v1362_v36  ;;  %v2353_v46 = vunpack.i.h.bf16 %v2351_v35  ;;  %v2352_v25 = vunpack.i.l.bf16 %v2351_v35  ;;  %v4441_v31 = vld [vmem:[#allocation34_spill] sm:$0xff] }
 0x143   : > { %v2348_v7 = vunpack.i.h.bf16 %v2346_v43  ;;  %v2347_v39 = vunpack.i.l.bf16 %v2346_v43  ;;  %1854 = vmatprep.mubr.msk.f32.mxu0 %vm1140_vm1, %v4433_v44  ;;  %1870 = vmatprep.mubr.msk.f32.mxu1 %vm1140_vm1, %v4434_v12  ;;  %v2082_v36 = vunpack.i.l.bf16 %v4441_v31 }
 0x145   : > { %v1281_v22 = vsel %vm1272_vm6, %v1248_v2, %v2347_v39  ;;  %v1297_v30 = vsel %vm1272_vm6, %v1264_v27, %v2348_v7  ;;  %v2361_v3 = vpop.permute.xlu1 %2360 }
 0x146   : > { %v2356_v29 = vpop.permute.xlu0 %2355  ;;  %v2363_v14 = vunpack.i.h.bf16 %v2361_v3  ;;  %v2362_v54 = vunpack.i.l.bf16 %v2361_v3  ;;  %v1314_v9 = vsel %vm1305_vm7, %v1281_v22, %v2352_v25  ;;  %v1330_v0 = vsel %vm1305_vm7, %v1297_v30, %v2353_v46  ;;  %v4443_v22 = vld [vmem:[#allocation49_spill] sm:$0xff]  ;;  %v4444_v3 = vld [vmem:[#allocation48_spill] sm:$0xff] }
 0x147   : > { %v2358_v42 = vunpack.i.h.bf16 %v2356_v29  ;;  %v2357_v10 = vunpack.i.l.bf16 %v2356_v29  ;;  %v1167_v30 = vsel %vm1140_vm1, %v4443_v22, %v2043_v59  ;;  %v1151_v29 = vsel %vm1140_vm1, %v4444_v3, %v2003_v61  ;;  %v4451_v22 = vld [vmem:[#allocation33_spill] sm:$0xff]  ;;  %v4452_v3 = vld [vmem:[#allocation39_spill] sm:$0xff] }
 0x148   : > { %v1347_v49 = vsel %vm1338_vm8, %v1314_v9, %v2362_v54  ;;  %v1363_v5 = vsel %vm1338_vm8, %v1330_v0, %v2363_v14  ;;  %v1184_v21 = vsel %vm1173_vm3, %v1151_v29, %v2082_v36  ;;  %v1200_v8 = vsel %vm1173_vm3, %v1167_v30, %v2122_v16 }
 0x149   : > { %v2371_v50 = vpop.permute.xlu1 %2370  ;;  %1565 = vmatmul.mubr.f32.gmra.mxu0 %v1347_v49  ;;  %1645 = vmatmul.mubr.f32.gmra.mxu1 %v1363_v5  ;;  %v1232_v58 = vsel %vm1206_vm4, %v1199_v41, %v2358_v42  ;;  %v1216_v52 = vsel %vm1206_vm4, %v1183_v15, %v2357_v10  ;;  %v4445_v49 = vld [vmem:[#allocation21_spill] sm:$0xff]  ;;  %v4446_v5 = vld [vmem:[#allocation42_spill] sm:$0xff]  ;;  %v2087_v30 = vunpack.i.l.bf16 %v4451_v22  ;;  %v2127_v29 = vunpack.i.l.bf16 %v4452_v3 }
 0x14a   : > { %v2366_v18 = vpop.permute.xlu0 %2365  ;;  %1855 = vmatprep.mubr.msk.f32.mxu0 %vm1140_vm1, %v4437_v60  ;;  %1871 = vmatprep.mubr.msk.f32.mxu1 %vm1140_vm1, %v4438_v63  ;;  %v2373_v34 = vunpack.i.h.bf16 %v2371_v50  ;;  %v2372_v13 = vunpack.i.l.bf16 %v2371_v50  ;;  %v4448_v15 = vld [vmem:[#allocation54_spill] sm:$0xff] }
 0x14b   : > { %v2368_v53 = vunpack.i.h.bf16 %v2366_v18  ;;  %v2367_v48 = vunpack.i.l.bf16 %v2366_v18  ;;  %v2047_v41 = vunpack.i.l.bf16 %v4448_v15 }
 0x14d   : > { %v2381_v11 = vpop.permute.xlu1 %2380  ;;  %v1249_v51 = vsel %vm1239_vm5, %v1216_v52, %v2367_v48  ;;  %v1265_v57 = vsel %vm1239_vm5, %v1232_v58, %v2368_v53 }
 0x14e   : > { %v2376_v26 = vpop.permute.xlu0 %2375  ;;  %v1282_v24 = vsel %vm1272_vm6, %v1249_v51, %v2372_v13  ;;  %v1298_v55 = vsel %vm1272_vm6, %v1265_v57, %v2373_v34  ;;  %v2383_v7 = vunpack.i.h.bf16 %v2381_v11  ;;  %v2382_v39 = vunpack.i.l.bf16 %v2381_v11 }
 0x14f   : > { %v2378_v56 = vunpack.i.h.bf16 %v2376_v26  ;;  %v2377_v6 = vunpack.i.l.bf16 %v2376_v26  ;;  %v2083_v34 = vunpack.i.h.bf16 %v4441_v31  ;;  %v2123_v13 = vunpack.i.h.bf16 %v4442_v17  ;;  %v4449_v31 = vld [vmem:[#allocation30_spill] sm:$0xff]  ;;  %v4450_v17 = vld [vmem:[#allocation31_spill] sm:$0xff] }
 0x150   : > { %v1217_v9 = vsel %vm1206_vm4, %v1184_v21, %v2382_v39  ;;  %v1233_v0 = vsel %vm1206_vm4, %v1200_v8, %v2383_v7  ;;  %v1152_v36 = vsel %vm1140_vm1, %v4449_v31, %v2007_v33  ;;  %v1168_v16 = vsel %vm1140_vm1, %v4450_v17, %v2047_v41 }
 0x151   : > { %v2391_v35 = vpop.permute.xlu1 %2390  ;;  %v1315_v46 = vsel %vm1305_vm7, %v1282_v24, %v2377_v6  ;;  %v1331_v25 = vsel %vm1305_vm7, %v1298_v55, %v2378_v56  ;;  %v2088_v31 = vunpack.i.h.bf16 %v4451_v22 }
 0x152   : > { %v2386_v43 = vpop.permute.xlu0 %2385  ;;  %v2393_v2 = vunpack.i.h.bf16 %v2391_v35  ;;  %v2392_v27 = vunpack.i.l.bf16 %v2391_v35  ;;  %v1185_v35 = vsel %vm1173_vm3, %v1152_v36, %v2083_v34 }
 0x153   : > { %v2388_v44 = vunpack.i.h.bf16 %v2386_v43  ;;  %v2387_v12 = vunpack.i.l.bf16 %v2386_v43  ;;  %v1201_v43 = vsel %vm1173_vm3, %v1168_v16, %v2123_v13 }
 0x154   : > { %v1250_v42 = vsel %vm1239_vm5, %v1217_v9, %v2392_v27  ;;  %v1266_v10 = vsel %vm1239_vm5, %v1233_v0, %v2393_v2 }
 0x155   : > { %v1348_v14 = vsel %vm1338_vm8, %v1315_v46, %v2387_v12  ;;  %v1364_v54 = vsel %vm1338_vm8, %v1331_v25, %v2388_v44  ;;  %v2401_v40 = vpop.permute.xlu1 %2400  ;;  %v2008_v46 = vunpack.i.h.bf16 %v4447_v23  ;;  %v2048_v25 = vunpack.i.h.bf16 %v4448_v15 }
 0x156   : > { %v2396_v62 = vpop.permute.xlu0 %2395  ;;  %1570 = vmatmul.mubr.f32.gmra.mxu0 %v1348_v14  ;;  %1650 = vmatmul.mubr.f32.gmra.mxu1 %v1364_v54  ;;  %v2403_v50 = vunpack.i.h.bf16 %v2401_v40  ;;  %v2402_v18 = vunpack.i.l.bf16 %v2401_v40 }
 0x157   : > { %v2398_v45 = vunpack.i.h.bf16 %v2396_v62  ;;  %v2397_v19 = vunpack.i.l.bf16 %v2396_v62  ;;  %1856 = vmatprep.mubr.msk.f32.mxu0 %vm1140_vm1, %v4445_v49  ;;  %1872 = vmatprep.mubr.msk.f32.mxu1 %vm1140_vm1, %v4446_v5 }
 0x159   : > { %v1283_v53 = vsel %vm1272_vm6, %v1250_v42, %v2397_v19  ;;  %v1299_v48 = vsel %vm1272_vm6, %v1266_v10, %v2398_v45  ;;  %v2411_v60 = vpop.permute.xlu1 %2410  ;;  %v4453_v42 = vld [vmem:[#allocation56_spill] sm:$0xff] }
 0x15a   : > { %v2406_v63 = vpop.permute.xlu0 %2405  ;;  %v2413_v32 = vunpack.i.h.bf16 %v2411_v60  ;;  %v2412_v20 = vunpack.i.l.bf16 %v2411_v60  ;;  %v1316_v58 = vsel %vm1305_vm7, %v1283_v53, %v2402_v18  ;;  %v1332_v52 = vsel %vm1305_vm7, %v1299_v48, %v2403_v50  ;;  %v4454_v50 = vld [vmem:[#allocation57_spill] sm:$0xff] }
 0x15b   : > { %v2408_v51 = vunpack.i.h.bf16 %v2406_v63  ;;  %v2407_v57 = vunpack.i.l.bf16 %v2406_v63  ;;  %v1153_v10 = vsel %vm1140_vm1, %v4453_v42, %v2008_v46  ;;  %v1169_v18 = vsel %vm1140_vm1, %v4454_v50, %v2048_v25  ;;  %v4459_v50 = vld [vmem:[#allocation59_spill] sm:$0xff] }
 0x15c   : > { %v1349_v11 = vsel %vm1338_vm8, %v1316_v58, %v2412_v20  ;;  %v1365_v26 = vsel %vm1338_vm8, %v1332_v52, %v2413_v32  ;;  %v1186_v60 = vsel %vm1173_vm3, %v1153_v10, %v2087_v30  ;;  %v1202_v63 = vsel %vm1173_vm3, %v1169_v18, %v2127_v29 }
 0x15d   : > { %v2421_v56 = vpop.permute.xlu1 %2420  ;;  %1575 = vmatmul.mubr.f32.gmra.mxu0 %v1349_v11  ;;  %1655 = vmatmul.mubr.f32.gmra.mxu1 %v1365_v26  ;;  %v1234_v24 = vsel %vm1206_vm4, %v1201_v43, %v2408_v51  ;;  %v1218_v55 = vsel %vm1206_vm4, %v1185_v35, %v2407_v57 }
 0x15e   : > { %v2416_v6 = vpop.permute.xlu0 %2415  ;;  %1857 = vmatprep.mubr.msk.f32.mxu0 %vm1140_vm1, %v4414_v38  ;;  %1873 = vmatprep.mubr.msk.f32.mxu1 %vm1140_vm1, %v4415_v37  ;;  %v2423_v7 = vunpack.i.h.bf16 %v2421_v56  ;;  %v2422_v39 = vunpack.i.l.bf16 %v2421_v56 }
 0x15f   : > { %v2418_v61 = vunpack.i.h.bf16 %v2416_v6  ;;  %v2417_v59 = vunpack.i.l.bf16 %v2416_v6 }
 0x161   : > { %v2431_v38 = vpop.permute.xlu1 %2430  ;;  %v1251_v37 = vsel %vm1239_vm5, %v1218_v55, %v2417_v59  ;;  %v1267_v12 = vsel %vm1239_vm5, %v1234_v24, %v2418_v61  ;;  %v4455_v61 = vld [vmem:[#allocation53_spill] sm:$0xff] }
 0x162   : > { %v2426_v44 = vpop.permute.xlu0 %2425  ;;  %v1284_v21 = vsel %vm1272_vm6, %v1251_v37, %v2422_v39  ;;  %v1300_v8 = vsel %vm1272_vm6, %v1267_v12, %v2423_v7  ;;  %v2433_v40 = vunpack.i.h.bf16 %v2431_v38  ;;  %v2432_v62 = vunpack.i.l.bf16 %v2431_v38  ;;  %v4456_v39 = vld [vmem:[#allocation35_spill] sm:$0xff]  ;;  %v4457_v37 = vld [vmem:[#allocation32_spill] sm:$0xff] }
 0x163   : > { %v2428_v2 = vunpack.i.h.bf16 %v2426_v44  ;;  %v2427_v27 = vunpack.i.l.bf16 %v2426_v44  ;;  %v2012_v59 = vunpack.i.l.bf16 %v4455_v61  ;;  %v2013_v29 = vunpack.i.h.bf16 %v4455_v61 }
 0x164   : > { %v1235_v23 = vsel %vm1206_vm4, %v1202_v63, %v2433_v40  ;;  %v1219_v33 = vsel %vm1206_vm4, %v1186_v60, %v2432_v62 }
 0x165   : > { %v2441_v14 = vpop.permute.xlu1 %2440  ;;  %v1317_v49 = vsel %vm1305_vm7, %v1284_v21, %v2427_v27  ;;  %v1333_v5 = vsel %vm1305_vm7, %v1300_v8, %v2428_v2  ;;  %v1154_v38 = vsel %vm1140_vm1, %v4456_v39, %v2012_v59  ;;  %v1155_v18 = vsel %vm1140_vm1, %v4459_v50, %v2013_v29 }
 0x166   : > { %v2436_v54 = vpop.permute.xlu0 %2435  ;;  %v2443_v45 = vunpack.i.h.bf16 %v2441_v14  ;;  %v2442_v19 = vunpack.i.l.bf16 %v2441_v14  ;;  %v1187_v44 = vsel %vm1173_vm3, %v1154_v38, %v2088_v31  ;;  %v4458_v14 = vld [vmem:[#allocation58_spill] sm:$0xff] }
 0x167   : > { %v2438_v9 = vunpack.i.h.bf16 %v2436_v54  ;;  %v2437_v0 = vunpack.i.l.bf16 %v2436_v54  ;;  %v2092_v54 = vunpack.i.l.bf16 %v4458_v14 }
 0x168   : > { %v1252_v58 = vsel %vm1239_vm5, %v1219_v33, %v2442_v19  ;;  %v1268_v52 = vsel %vm1239_vm5, %v1235_v23, %v2443_v45  ;;  %v4460_v23 = vld [vmem:[#allocation61_spill] sm:$0xff] }
 0x169   : > { %v1350_v53 = vsel %vm1338_vm8, %v1317_v49, %v2437_v0  ;;  %v1366_v48 = vsel %vm1338_vm8, %v1333_v5, %v2438_v9  ;;  %v2451_v32 = vpop.permute.xlu1 %2450  ;;  %v1188_v60 = vsel %vm1173_vm3, %v1155_v18, %v2092_v54 }
 0x16a   : > { %v2446_v20 = vpop.permute.xlu0 %2445  ;;  %1580 = vmatmul.mubr.f32.gmra.mxu0 %v1350_v53  ;;  %1660 = vmatmul.mubr.f32.gmra.mxu1 %v1366_v48  ;;  %v2453_v34 = vunpack.i.h.bf16 %v2451_v32  ;;  %v2452_v13 = vunpack.i.l.bf16 %v2451_v32 }
 0x16b   : > { %v2448_v15 = vunpack.i.h.bf16 %v2446_v20  ;;  %v2447_v41 = vunpack.i.l.bf16 %v2446_v20  ;;  %1858 = vmatprep.mubr.msk.f32.mxu0 %vm1140_vm1, %v4419_v1  ;;  %1874 = vmatprep.mubr.msk.f32.mxu1 %vm1140_vm1, %v3702_v4 }
 0x16d   : > { %v1285_v11 = vsel %vm1272_vm6, %v1252_v58, %v2447_v41  ;;  %v1301_v26 = vsel %vm1272_vm6, %v1268_v52, %v2448_v15  ;;  %v2461_v51 = vpop.permute.xlu1 %2460  ;;  %v4461_v58 = vld [vmem:[#allocation27_spill] sm:$0xff] }
 0x16e   : > { %v2456_v57 = vpop.permute.xlu0 %2455  ;;  %v2463_v56 = vunpack.i.h.bf16 %v2461_v51  ;;  %v2462_v6 = vunpack.i.l.bf16 %v2461_v51  ;;  %v1318_v1 = vsel %vm1305_vm7, %v1285_v11, %v2452_v13  ;;  %v1334_v4 = vsel %vm1305_vm7, %v1301_v26, %v2453_v34  ;;  %v4462_v52 = vld [vmem:[#allocation11_spill] sm:$0xff] }
 0x16f   : > { %v2458_v16 = vunpack.i.h.bf16 %v2456_v57  ;;  %v2457_v35 = vunpack.i.l.bf16 %v2456_v57 }
 0x170   : > { %v1351_v36 = vsel %vm1338_vm8, %v1318_v1, %v2462_v6  ;;  %v1367_v17 = vsel %vm1338_vm8, %v1334_v4, %v2463_v56  ;;  %v4463_v56 = vld [vmem:[#allocation52_spill] sm:$0xff]  ;;  %v2093_v1 = vunpack.i.h.bf16 %v4458_v14 }
 0x171   : > { %v2471_v43 = vpop.permute.xlu1 %2470  ;;  %1585 = vmatmul.mubr.f32.gmra.mxu0 %v1351_v36  ;;  %1665 = vmatmul.mubr.f32.gmra.mxu1 %v1367_v17  ;;  %v1236_v12 = vsel %vm1206_vm4, %v4457_v37, %v2458_v16  ;;  %v1220_v2 = vsel %vm1206_vm4, %v1187_v44, %v2457_v35  ;;  %v2017_v6 = vunpack.i.l.bf16 %v4463_v56 }
 0x172   : > { %v2466_v24 = vpop.permute.xlu0 %2465  ;;  %1859 = vmatprep.mubr.msk.f32.mxu0 %vm1140_vm1, %v4420_v47  ;;  %1875 = vmatprep.mubr.msk.f32.mxu1 %vm1140_vm1, %v3742_v28  ;;  %v2473_v27 = vunpack.i.h.bf16 %v2471_v43  ;;  %v2472_v46 = vunpack.i.l.bf16 %v2471_v43 }
 0x173   : > { %v2468_v55 = vunpack.i.h.bf16 %v2466_v24  ;;  %v2467_v7 = vunpack.i.l.bf16 %v2466_v24 }
 0x175   : > { %v2481_v25 = vpop.permute.xlu1 %2480  ;;  %v1253_v30 = vsel %vm1239_vm5, %v1220_v2, %v2467_v7  ;;  %v1269_v47 = vsel %vm1239_vm5, %v1236_v12, %v2468_v55  ;;  %v4464_v55 = vld [vmem:[#allocation8_spill] sm:$0xff] }
 0x176   : > { %v2476_v22 = vpop.permute.xlu0 %2475  ;;  %v1286_v40 = vsel %vm1272_vm6, %v1253_v30, %v2472_v46  ;;  %v1302_v62 = vsel %vm1272_vm6, %v1269_v47, %v2473_v27  ;;  %v2483_v9 = vunpack.i.h.bf16 %v2481_v25  ;;  %v2482_v0 = vunpack.i.l.bf16 %v2481_v25  ;;  %v4465_v2 = vld [vmem:[#allocation28_spill] sm:$0xff] }
 0x177   : > { %v2478_v3 = vunpack.i.h.bf16 %v2476_v22  ;;  %v2477_v28 = vunpack.i.l.bf16 %v2476_v22  ;;  %v1156_v7 = vsel %vm1140_vm1, %v4464_v55, %v2017_v6  ;;  %v4466_v27 = vld [vmem:[#allocation12_spill] sm:$0xff] }
 0x178   : > { %v1221_v20 = vsel %vm1206_vm4, %v1188_v60, %v2482_v0  ;;  %v1237_v33 = vsel %vm1206_vm4, %v4460_v23, %v2483_v9  ;;  %v1189_v44 = vsel %vm1173_vm3, %v1156_v7, %v2093_v1  ;;  %v4467_v46 = vld [vmem:[#allocation60_spill] sm:$0xff] }
 0x179   : > { %v1319_v42 = vsel %vm1305_vm7, %v1286_v40, %v2477_v28  ;;  %v1335_v10 = vsel %vm1305_vm7, %v1302_v62, %v2478_v3 }
 0x17a   : > { %v2491_v21 = vpop.permute.xlu1 %2490  ;;  %v2486_v8 = vpop.permute.xlu0 %2485 }
 0x17b   : > { %v2488_v45 = vunpack.i.h.bf16 %v2486_v8  ;;  %v2487_v19 = vunpack.i.l.bf16 %v2486_v8  ;;  %v2493_v49 = vunpack.i.h.bf16 %v2491_v21  ;;  %v2492_v5 = vunpack.i.l.bf16 %v2491_v21 }
 0x17d   : > { %v1352_v53 = vsel %vm1338_vm8, %v1319_v42, %v2487_v19  ;;  %v1368_v48 = vsel %vm1338_vm8, %v1335_v10, %v2488_v45  ;;  %v1254_v34 = vsel %vm1239_vm5, %v1221_v20, %v2492_v5  ;;  %v1270_v13 = vsel %vm1239_vm5, %v1237_v33, %v2493_v49  ;;  %v4066_v19 = vld [vmem:[%s4220_s2] ss:$0 sm:$0xff] }
 0x17e   : > { %v2501_v63 = vpop.permute.xlu1 %2500  ;;  %v2496_v32 = vpop.permute.xlu0 %2495  ;;  %1590 = vmatmul.mubr.f32.gmra.mxu0 %v1352_v53  ;;  %1670 = vmatmul.mubr.f32.gmra.mxu1 %v1368_v48 }
 0x17f   : > { %v2498_v15 = vunpack.i.h.bf16 %v2496_v32  ;;  %v2497_v41 = vunpack.i.l.bf16 %v2496_v32  ;;  %1860 = vmatprep.mubr.msk.f32.mxu0 %vm1140_vm1, %v4461_v58  ;;  %1876 = vmatprep.mubr.msk.f32.mxu1 %vm1140_vm1, %v4462_v52  ;;  %v2503_v11 = vunpack.i.h.bf16 %v2501_v63  ;;  %v2502_v26 = vunpack.i.l.bf16 %v2501_v63 }
 0x181   : > { %v1287_v51 = vsel %vm1272_vm6, %v1254_v34, %v2497_v41  ;;  %v1303_v57 = vsel %vm1272_vm6, %v1270_v13, %v2498_v15 }
 0x182   : > { %v2511_v61 = vpop.permute.xlu1 %2510  ;;  %v2506_v59 = vpop.permute.xlu0 %2505  ;;  %v1320_v16 = vsel %vm1305_vm7, %v1287_v51, %v2502_v26  ;;  %v1336_v35 = vsel %vm1305_vm7, %v1303_v57, %v2503_v11 }
 0x183   : > { %v2513_v4 = vunpack.i.h.bf16 %v2511_v61  ;;  %v2512_v31 = vunpack.i.l.bf16 %v2511_v61  ;;  %v2508_v36 = vunpack.i.h.bf16 %v2506_v59  ;;  %v2507_v17 = vunpack.i.l.bf16 %v2506_v59 }
 0x185   : > { %v1353_v43 = vsel %vm1338_vm8, %v1320_v16, %v2512_v31  ;;  %v1369_v24 = vsel %vm1338_vm8, %v1336_v35, %v2513_v4  ;;  %v1238_v25 = vsel %vm1206_vm4, %v4467_v46, %v2508_v36  ;;  %v1222_v22 = vsel %vm1206_vm4, %v1189_v44, %v2507_v17 }
 0x186   : > { %v2516_v39 = vpop.permute.xlu0 %2515  ;;  %1595 = vmatmul.mubr.f32.gmra.mxu0 %v1353_v43  ;;  %1675 = vmatmul.mubr.f32.gmra.mxu1 %v1369_v24  ;;  %v2521_v38 = vpop.permute.xlu1 %2520 }
 0x187   : > { %v2518_v37 = vunpack.i.h.bf16 %v2516_v39  ;;  %v2517_v12 = vunpack.i.l.bf16 %v2516_v39  ;;  %1861 = vmatprep.mubr.msk.f32.mxu0 %vm1140_vm1, %v4465_v2  ;;  %1877 = vmatprep.mubr.msk.f32.mxu1 %vm1140_vm1, %v4466_v27  ;;  %v2523_v30 = vunpack.i.h.bf16 %v2521_v38  ;;  %v2522_v47 = vunpack.i.l.bf16 %v2521_v38 }
 0x189   : > { %v1255_v3 = vsel %vm1239_vm5, %v1222_v22, %v2517_v12  ;;  %v1271_v28 = vsel %vm1239_vm5, %v1238_v25, %v2518_v37 }
 0x18a   : > { %v2526_v29 = vpop.permute.xlu0 %2525  ;;  %v1078_v21 = vpop.permute.xlu1 %1077  ;;  %v1288_v8 = vsel %vm1272_vm6, %v1255_v3, %v2522_v47  ;;  %v1304_v40 = vsel %vm1272_vm6, %v1271_v28, %v2523_v30 }
 0x18b   : > { %v2528_v14 = vunpack.i.h.bf16 %v2526_v29  ;;  %v2527_v54 = vunpack.i.l.bf16 %v2526_v29 }
 0x18d   : > { %v1321_v62 = vsel %vm1305_vm7, %v1288_v8, %v2527_v54  ;;  %v1337_v9 = vsel %vm1305_vm7, %v1304_v40, %v2528_v14 }
 0x18e   : > { %v1354_v0 = vsel %vm1338_vm8, %v1321_v62, %v1078_v21  ;;  %v1370_v45 = vsel %vm1338_vm8, %v1337_v9, %v2513_v4 }
 0x18f   : > { %1600 = vmatmul.mubr.f32.gmra.mxu0 %v1354_v0  ;;  %1680 = vmatmul.mubr.f32.gmra.mxu1 %v1370_v45 }
 0x1b9   : > { %v1526_v49 = vpop.f32.mrf.mxu0  ;;  %v1606_v5 = vpop.f32.mrf.mxu1 }
 0x1ba   : > { %v1527_v42 = vadd.f32 %v4066_v19, %v1526_v49  ;;  %v1607_v10 = vadd.f32 %v4066_v19, %v1606_v5 }
 0x1bb   : > { %v1528_v50 = vpop.f32.mrf.mxu0  ;;  %v1608_v18 = vpop.f32.mrf.mxu1 }
 0x1bc   : > { %v1685_v53 = vmax.f32 %v1527_v42, 0.0  ;;  %v1701_v48 = vmax.f32 %v1607_v10, 0.0 }
 0x1be   : > { %1717 = vst.msk [vmem:[%s4072_s10] sm:$0xff] %vm1173_vm3, %v1685_v53  ;;  %1733 = vst.msk [vmem:[%s4072_s10 + $0x80] sm:$0xff] %vm1173_vm3, %v1701_v48 }
 0x1c6   : > { %v1531_v60 = vpop.f32.mrf.mxu0  ;;  %v1611_v63 = vpop.f32.mrf.mxu1 }
 0x1c7   : > { %v1532_v32 = vadd.f32 %v4066_v19, %v1531_v60  ;;  %v1612_v20 = vadd.f32 %v4066_v19, %v1611_v63 }
 0x1c8   : > { %v1533_v23 = vpop.f32.mrf.mxu0  ;;  %v1613_v33 = vpop.f32.mrf.mxu1 }
 0x1c9   : > { %v1686_v15 = vmax.f32 %v1532_v32, 0.0  ;;  %v1702_v41 = vmax.f32 %v1612_v20, 0.0 }
 0x1cb   : > { %1718 = vst.msk [vmem:[%s4072_s10 + $0x8] sm:$0xff] %vm1173_vm3, %v1686_v15  ;;  %1734 = vst.msk [vmem:[%s4072_s10 + $0x88] sm:$0xff] %vm1173_vm3, %v1702_v41 }
 0x1cd   : > { %v1536_v58 = vpop.f32.mrf.mxu0  ;;  %v1616_v52 = vpop.f32.mrf.mxu1 }
 0x1ce   : > { %v1537_v34 = vadd.f32 %v4066_v19, %v1536_v58  ;;  %v1617_v13 = vadd.f32 %v4066_v19, %v1616_v52 }
 0x1cf   : > { %v1538_v11 = vpop.f32.mrf.mxu0  ;;  %v1618_v26 = vpop.f32.mrf.mxu1 }
 0x1d0   : > { %v1687_v51 = vmax.f32 %v1537_v34, 0.0  ;;  %v1703_v57 = vmax.f32 %v1617_v13, 0.0 }
 0x1d2   : > { %1719 = vst.msk [vmem:[%s4072_s10 + $0x10] sm:$0xff] %vm1173_vm3, %v1687_v51  ;;  %1735 = vst.msk [vmem:[%s4072_s10 + $0x90] sm:$0xff] %vm1173_vm3, %v1703_v57 }
 0x1da   : > { %v1541_v56 = vpop.f32.mrf.mxu0  ;;  %v1621_v6 = vpop.f32.mrf.mxu1 }
 0x1db   : > { %v1542_v61 = vadd.f32 %v4066_v19, %v1541_v56  ;;  %v1622_v59 = vadd.f32 %v4066_v19, %v1621_v6 }
 0x1dc   : > { %v1543_v1 = vpop.f32.mrf.mxu0  ;;  %v1623_v4 = vpop.f32.mrf.mxu1 }
 0x1dd   : > { %v1688_v31 = vmax.f32 %v1542_v61, 0.0  ;;  %v1704_v36 = vmax.f32 %v1622_v59, 0.0 }
 0x1df   : > { %1720 = vst.msk [vmem:[%s4072_s10 + $0x18] sm:$0xff] %vm1173_vm3, %v1688_v31  ;;  %1736 = vst.msk [vmem:[%s4072_s10 + $0x98] sm:$0xff] %vm1173_vm3, %v1704_v36 }
 0x1e1   : > { %v1546_v17 = vpop.f32.mrf.mxu0  ;;  %v1626_v16 = vpop.f32.mrf.mxu1 }
 0x1e2   : > { %v1547_v35 = vadd.f32 %v4066_v19, %v1546_v17  ;;  %v1627_v43 = vadd.f32 %v4066_v19, %v1626_v16 }
 0x1e3   : > { %v1548_v24 = vpop.f32.mrf.mxu0  ;;  %v1628_v55 = vpop.f32.mrf.mxu1 }
 0x1e4   : > { %v1689_v7 = vmax.f32 %v1547_v35, 0.0  ;;  %v1705_v39 = vmax.f32 %v1627_v43, 0.0 }
 0x1e6   : > { %1721 = vst.msk [vmem:[%s4072_s10 + $0x20] sm:$0xff] %vm1173_vm3, %v1689_v7  ;;  %1737 = vst.msk [vmem:[%s4072_s10 + $0xa0] sm:$0xff] %vm1173_vm3, %v1705_v39 }
 0x1ee   : > { %v1551_v38 = vpop.f32.mrf.mxu0  ;;  %v1631_v44 = vpop.f32.mrf.mxu1 }
 0x1ef   : > { %v1552_v37 = vadd.f32 %v4066_v19, %v1551_v38  ;;  %v1632_v12 = vadd.f32 %v4066_v19, %v1631_v44 }
 0x1f0   : > { %v1553_v2 = vpop.f32.mrf.mxu0  ;;  %v1633_v27 = vpop.f32.mrf.mxu1 }
 0x1f1   : > { %v1690_v46 = vmax.f32 %v1552_v37, 0.0  ;;  %v1706_v25 = vmax.f32 %v1632_v12, 0.0 }
 0x1f3   : > { %1722 = vst.msk [vmem:[%s4072_s10 + $0x28] sm:$0xff] %vm1173_vm3, %v1690_v46  ;;  %1738 = vst.msk [vmem:[%s4072_s10 + $0xa8] sm:$0xff] %vm1173_vm3, %v1706_v25 }
 0x1f5   : > { %v1556_v22 = vpop.f32.mrf.mxu0  ;;  %v1636_v30 = vpop.f32.mrf.mxu1 }
 0x1f6   : > { %v1557_v47 = vadd.f32 %v4066_v19, %v1556_v22  ;;  %v1637_v3 = vadd.f32 %v4066_v19, %v1636_v30 }
 0x1f7   : > { %v1558_v28 = vpop.f32.mrf.mxu0  ;;  %v1638_v29 = vpop.f32.mrf.mxu1 }
 0x1f8   : > { %v1691_v14 = vmax.f32 %v1557_v47, 0.0  ;;  %v1707_v54 = vmax.f32 %v1637_v3, 0.0 }
 0x1fa   : > { %1723 = vst.msk [vmem:[%s4072_s10 + $0x30] sm:$0xff] %vm1173_vm3, %v1691_v14  ;;  %1739 = vst.msk [vmem:[%s4072_s10 + $0xb0] sm:$0xff] %vm1173_vm3, %v1707_v54 }
 0x202   : > { %v1561_v21 = vpop.f32.mrf.mxu0  ;;  %v1641_v8 = vpop.f32.mrf.mxu1 }
 0x203   : > { %v1562_v40 = vadd.f32 %v4066_v19, %v1561_v21  ;;  %v1642_v62 = vadd.f32 %v4066_v19, %v1641_v8 }
 0x204   : > { %v1563_v9 = vpop.f32.mrf.mxu0  ;;  %v1643_v0 = vpop.f32.mrf.mxu1 }
 0x205   : > { %v1692_v45 = vmax.f32 %v1562_v40, 0.0  ;;  %v1708_v49 = vmax.f32 %v1642_v62, 0.0 }
 0x207   : > { %1724 = vst.msk [vmem:[%s4072_s10 + $0x38] sm:$0xff] %vm1173_vm3, %v1692_v45  ;;  %1740 = vst.msk [vmem:[%s4072_s10 + $0xb8] sm:$0xff] %vm1173_vm3, %v1708_v49 }
 0x209   : > { %v1566_v5 = vpop.f32.mrf.mxu0  ;;  %v1646_v42 = vpop.f32.mrf.mxu1 }
 0x20a   : > { %v1567_v10 = vadd.f32 %v4066_v19, %v1566_v5  ;;  %v1647_v50 = vadd.f32 %v4066_v19, %v1646_v42 }
 0x20b   : > { %v1568_v18 = vpop.f32.mrf.mxu0  ;;  %v1648_v53 = vpop.f32.mrf.mxu1 }
 0x20c   : > { %v1693_v48 = vmax.f32 %v1567_v10, 0.0  ;;  %v1709_v60 = vmax.f32 %v1647_v50, 0.0 }
 0x20e   : > { %1725 = vst.msk [vmem:[%s4072_s10 + $0x40] sm:$0xff] %vm1173_vm3, %v1693_v48  ;;  %1741 = vst.msk [vmem:[%s4072_s10 + $0xc0] sm:$0xff] %vm1173_vm3, %v1709_v60 }
 0x216   : > { %v1571_v63 = vpop.f32.mrf.mxu0  ;;  %v1651_v32 = vpop.f32.mrf.mxu1 }
 0x217   : > { %v1572_v20 = vadd.f32 %v4066_v19, %v1571_v63  ;;  %v1652_v23 = vadd.f32 %v4066_v19, %v1651_v32 }
 0x218   : > { %v1573_v33 = vpop.f32.mrf.mxu0  ;;  %v1653_v15 = vpop.f32.mrf.mxu1 }
 0x219   : > { %v1694_v41 = vmax.f32 %v1572_v20, 0.0  ;;  %v1710_v58 = vmax.f32 %v1652_v23, 0.0 }
 0x21b   : > { %1726 = vst.msk [vmem:[%s4072_s10 + $0x48] sm:$0xff] %vm1173_vm3, %v1694_v41  ;;  %1742 = vst.msk [vmem:[%s4072_s10 + $0xc8] sm:$0xff] %vm1173_vm3, %v1710_v58 }
 0x21d   : > { %v1576_v52 = vpop.f32.mrf.mxu0  ;;  %v1656_v34 = vpop.f32.mrf.mxu1 }
 0x21e   : > { %v1577_v13 = vadd.f32 %v4066_v19, %v1576_v52  ;;  %v1657_v11 = vadd.f32 %v4066_v19, %v1656_v34 }
 0x21f   : > { %v1578_v26 = vpop.f32.mrf.mxu0  ;;  %v1658_v51 = vpop.f32.mrf.mxu1 }
 0x220   : > { %v1695_v57 = vmax.f32 %v1577_v13, 0.0  ;;  %v1711_v56 = vmax.f32 %v1657_v11, 0.0 }
 0x222   : > { %1727 = vst.msk [vmem:[%s4072_s10 + $0x50] sm:$0xff] %vm1173_vm3, %v1695_v57  ;;  %1743 = vst.msk [vmem:[%s4072_s10 + $0xd0] sm:$0xff] %vm1173_vm3, %v1711_v56 }
 0x22a   : > { %v1581_v6 = vpop.f32.mrf.mxu0  ;;  %v1661_v61 = vpop.f32.mrf.mxu1 }
 0x22b   : > { %v1582_v59 = vadd.f32 %v4066_v19, %v1581_v6  ;;  %v1662_v1 = vadd.f32 %v4066_v19, %v1661_v61 }
 0x22c   : > { %v1583_v4 = vpop.f32.mrf.mxu0  ;;  %v1663_v31 = vpop.f32.mrf.mxu1 }
 0x22d   : > { %v1696_v36 = vmax.f32 %v1582_v59, 0.0  ;;  %v1712_v17 = vmax.f32 %v1662_v1, 0.0 }
 0x22f   : > { %1728 = vst.msk [vmem:[%s4072_s10 + $0x58] sm:$0xff] %vm1173_vm3, %v1696_v36  ;;  %1744 = vst.msk [vmem:[%s4072_s10 + $0xd8] sm:$0xff] %vm1173_vm3, %v1712_v17 }
 0x231   : > { %v1586_v16 = vpop.f32.mrf.mxu0  ;;  %v1666_v35 = vpop.f32.mrf.mxu1 }
 0x232   : > { %v1587_v43 = vadd.f32 %v4066_v19, %v1586_v16  ;;  %v1667_v24 = vadd.f32 %v4066_v19, %v1666_v35 }
 0x233   : > { %v1588_v55 = vpop.f32.mrf.mxu0  ;;  %v1668_v7 = vpop.f32.mrf.mxu1 }
 0x234   : > { %v1697_v39 = vmax.f32 %v1587_v43, 0.0  ;;  %v1713_v38 = vmax.f32 %v1667_v24, 0.0 }
 0x236   : > { %1729 = vst.msk [vmem:[%s4072_s10 + $0x60] sm:$0xff] %vm1173_vm3, %v1697_v39  ;;  %1745 = vst.msk [vmem:[%s4072_s10 + $0xe0] sm:$0xff] %vm1173_vm3, %v1713_v38 }
 0x23e   : > { %v1591_v44 = vpop.f32.mrf.mxu0  ;;  %v1671_v37 = vpop.f32.mrf.mxu1 }
 0x23f   : > { %v1592_v12 = vadd.f32 %v4066_v19, %v1591_v44  ;;  %v1672_v2 = vadd.f32 %v4066_v19, %v1671_v37 }
 0x240   : > { %v1593_v27 = vpop.f32.mrf.mxu0  ;;  %v1673_v46 = vpop.f32.mrf.mxu1 }
 0x241   : > { %v1698_v25 = vmax.f32 %v1592_v12, 0.0  ;;  %v1714_v22 = vmax.f32 %v1672_v2, 0.0 }
 0x243   : > { %1730 = vst.msk [vmem:[%s4072_s10 + $0x68] sm:$0xff] %vm1173_vm3, %v1698_v25  ;;  %1746 = vst.msk [vmem:[%s4072_s10 + $0xe8] sm:$0xff] %vm1173_vm3, %v1714_v22 }
 0x246   : > { %v1596_v30 = vpop.f32.mrf.mxu0  ;;  %v1676_v47 = vpop.f32.mrf.mxu1 }
 0x247   : > { %v1597_v3 = vadd.f32 %v4066_v19, %v1596_v30  ;;  %v1677_v28 = vadd.f32 %v4066_v19, %v1676_v47 }
 0x248   : > { %v1598_v29 = vpop.f32.mrf.mxu0  ;;  %v1678_v14 = vpop.f32.mrf.mxu1 }
 0x249   : > { %v1699_v54 = vmax.f32 %v1597_v3, 0.0  ;;  %v1715_v21 = vmax.f32 %v1677_v28, 0.0 }
 0x24b   : > { %1731 = vst.msk [vmem:[%s4072_s10 + $0x70] sm:$0xff] %vm1173_vm3, %v1699_v54  ;;  %1747 = vst.msk [vmem:[%s4072_s10 + $0xf0] sm:$0xff] %vm1173_vm3, %v1715_v21 }
 0x24f   : > { %v1601_v8 = vpop.f32.mrf.mxu0  ;;  %v1681_v40 = vpop.f32.mrf.mxu1 }
 0x250   : > { %v1602_v62 = vadd.f32 %v4066_v19, %v1601_v8  ;;  %v1682_v9 = vadd.f32 %v4066_v19, %v1681_v40 }
 0x251   : > { %v1603_v0 = vpop.f32.mrf.mxu0  ;;  %v1683_v45 = vpop.f32.mrf.mxu1 }
 0x252   : > { %v1700_v49 = vmax.f32 %v1602_v62, 0.0  ;;  %v1716_v5 = vmax.f32 %v1682_v9, 0.0 }
 0x254   : > { %1732 = vst.msk [vmem:[%s4072_s10 + $0x78] sm:$0xff] %vm1173_vm3, %v1700_v49  ;;  %1748 = vst.msk [vmem:[%s4072_s10 + $0xf8] sm:$0xff] %vm1173_vm3, %v1716_v5 }
 0x255   : > { %2575 = shalt.err (!%p2572_p10)
}
 0x256   : > { %s2576_s26 = scalar_lea.hbm %s4169_s7, 4096  ;;  %s2580_s29 = scalar_lea.hbm %s4221_s3, 8192 }
 0x257   : > { %p2577_p0 = scmp.ne.s32.totalorder %s4169_s7, %s2576_s26  ;;  %p2581_p1 = scmp.lt.s32.totalorder %s4169_s7, %s4221_s3 }
 0x258   : > { %p2582_p3 = scmp.lt.s32.totalorder %s2580_s29, %s2576_s26 }
 0x259   : > { %p2578_p2 = pnand %p2577_p0, %p4468_p12 }
 0x25a   : > { %p2583_p6 = por %p2582_p3, %p2581_p1 }
 0x25b   : > { %p2579_p9 = pneg %p2578_p2 }
 0x25d   : > { %p2584_p11 = pnand %p2583_p6, %p2579_p9 }
 0x25f   : > { %2587 = shalt.err (!%p2584_p11)
}
 0x260   : > { %s2640_s20 = smov 128   ;;  %s2641_s10 = smov 8  }
 0x261   : > { %1923 = dma.vmem_to_hbm [thread:$0]  (%p4468_p12), %s4171_s23, 4096, %s4169_s7, %s1750_s16, %s2640_s20, %s2640_s20, %s2641_s10  }
 0x262 PF: > { %s1778_s9 = sand.u32 1, %s2614_s12   ;;  %p4469_p13 = scmp.ne.s32.totalorder %s4309_s25, 0 }
 0x263   : > { %p4470_p4 = scmp.ge.s32.totalorder %s2626_s15, 2  ;;  %s1779_s4 = scalar_lea.sflag [#allocation4], %s1778_s9 }
 0x265   : > { %p1930_p5 = pnand %p4470_p4, %p4469_p13 }
 0x267   : > { %p1931_p7 = pneg %p1930_p5 }
 0x269   : > { %2609 = dma.done.wait (%p1931_p7), %s1779_s4, 4096  }
 0x26a   : > { %2611 = vsyncadd (%p1931_p7), %s1779_s4, 4294963200  ;;  %p16_p8 = scmp.ge.s32.totalorder %s2687_s18, 4   ;;  %s4471_s12 = smov %s2618_s13 }
 0x26b   : > { %s4472_s13 = smov %s2622_s14  ;;  %s4473_s14 = smov %s2699_s21 }
 0x26c   : > { %s4474_s15 = smov %s2687_s18  ;;  %18 = sbr.rel (!%p16_p8) target bundleno = 5 (0x5), region = 77 }
 0x271   :  { %1784 = vsyncpa [#allocation3], 1 }
 0x272   :  { %1786 = vsyncpa [#allocation3 + $0x1], 1 }
 0x273   :  { %1787 = vsyncpa [#allocation4], 1 }
 0x274   :  { %1789 = vsyncpa [#allocation4 + $0x1], 1 }

</bundles_post_ra>
